<compile_context>
chip_gen: v7x
topology: tpu7x:2x2x1
jax: 0.10.0
libtpu: 0.0.40
codegen_flags: <defaults>
</compile_context>

<pallas_src>
import math

import jax
import jax.numpy as jnp
from jax.experimental import pallas as pl
from jax.experimental.pallas import tpu as pltpu


def _round_up(x, m):
    return -(-x // m) * m


# -----------------------------------------------------------------------------
# Tiled Pallas kernel for one GCN aggregation step:  out = relu(A_hat @ XW + b)
# -----------------------------------------------------------------------------
def _gcn_agg_relu_kernel(adj_ref, xw_ref, b_ref, out_ref, acc_ref):
    k = pl.program_id(1)
    tk = adj_ref.shape[1]

    @pl.when(k == 0)
    def _():
        acc_ref[...] = jnp.zeros_like(acc_ref)

    # XW is fully VMEM-resident; slice the (tk, cp) panel for this k step.
    off = pl.multiple_of(k * tk, tk)
    acc_ref[...] += jnp.dot(
        adj_ref[...],
        xw_ref[pl.ds(off, tk), :],
        preferred_element_type=jnp.float32,
    )

    @pl.when(k == pl.num_programs(1) - 1)
    def _():
        out_ref[...] = jnp.maximum(acc_ref[...] + b_ref[...], 0.0).astype(
            out_ref.dtype
        )


def gcn_agg_relu(adj, xw, b, *, tm=512, tk=512, out_dtype=jnp.float32):
    """relu(adj @ xw + b), tiled over (row_block, k_block).

    adj: (Np, Np) bf16 normalized adjacency (Np multiple of tm and tk)
    xw:  (Np, Cp) bf16 projected features   (Cp multiple of 128), VMEM-resident
    b:   (1,  Cp) f32 bias
    Returns (Np, Cp) out_dtype.
    """
    n = adj.shape[0]
    cp = xw.shape[1]
    assert adj.shape[1] == n and xw.shape[0] == n
    assert n % tm == 0 and n % tk == 0 and cp % 128 == 0

    grid = (n // tm, n // tk)
    out_itemsize = jnp.dtype(out_dtype).itemsize

    # Explicit VMEM budget (double buffers for pipelined operands) so the
    # resident XW panel also fits under v5e's 16 MiB scoped default.
    vmem_need = (
        2 * tm * tk * adj.dtype.itemsize      # adj tile, double-buffered
        + 2 * n * cp * xw.dtype.itemsize      # resident XW (x2 to be safe)
        + 2 * tm * cp * out_itemsize          # output tile, double-buffered
        + tm * cp * 4                         # f32 accumulator scratch
        + 2 * 8 * cp * 4                      # bias (rounded to (8,128) tile)
    )
    vmem_limit = min(max(32 << 20, int(1.5 * vmem_need) + (4 << 20)), 64 << 20)

    flops = 2 * n * n * cp
    bytes_accessed = (
        adj.size * adj.dtype.itemsize          # adjacency, read once
        + xw.size * xw.dtype.itemsize          # XW, read once (resident)
        + n * cp * out_itemsize                # output write
        + b.size * b.dtype.itemsize
    )

    return pl.pallas_call(
        _gcn_agg_relu_kernel,
        out_shape=jax.ShapeDtypeStruct((n, cp), out_dtype),
        grid_spec=pltpu.PrefetchScalarGridSpec(
            num_scalar_prefetch=0,
            grid=grid,
            in_specs=[
                pl.BlockSpec((tm, tk), lambda i, k: (i, k)),   # adj tile
                pl.BlockSpec((n, cp), lambda i, k: (0, 0)),    # XW, VMEM-resident
                pl.BlockSpec((1, cp), lambda i, k: (0, 0)),    # bias, resident
            ],
            out_specs=pl.BlockSpec((tm, cp), lambda i, k: (i, 0)),
            scratch_shapes=[pltpu.VMEM((tm, cp), jnp.float32)],
        ),
        compiler_params=pltpu.CompilerParams(
            dimension_semantics=("parallel", "arbitrary"),
            vmem_limit_bytes=vmem_limit,
        ),
        cost_estimate=pl.CostEstimate(
            flops=flops, transcendentals=0, bytes_accessed=bytes_accessed
        ),
    )(adj, xw, b)


# -----------------------------------------------------------------------------
# Plain-JAX glue
# -----------------------------------------------------------------------------
def gcn_normalized_adjacency_padded(edge_index, num_nodes, n_pad, dtype):
    """D^-1/2 (A + I) D^-1/2, built directly at padded size, cast once."""
    src, dst = edge_index[0], edge_index[1]
    a = jnp.zeros((n_pad, n_pad), jnp.float32)
    # message flows src -> dst (matches PyG propagate); .set dedups duplicate
    # edges (PyG would count each message on a multigraph).
    a = a.at[dst, src].set(1.0)
    # add remaining self loops: diagonal := 1 for real nodes only.
    diag = jnp.arange(num_nodes)
    a = a.at[diag, diag].set(1.0)
    deg = jnp.sum(a, axis=1)
    dinv = jnp.where(deg > 0, 1.0 / jnp.sqrt(deg), 0.0)
    # fused normalize + cast; padded rows/cols stay zero.
    return (dinv[:, None] * a * dinv[None, :]).astype(dtype)


def gae_forward_pallas(x, edge_index, w1, b1, w2, b2, *, tm=512, tk=512):
    """GAE.forward == encode: z = relu(GCN2(relu(GCN1(x, A)), A))."""
    n, _ = x.shape
    h_c = w1.shape[1]
    out_c = w2.shape[1]

    # Pad node count to a tile multiple, channel dims to 128 (lane-dense).
    n_pad = _round_up(n, math.lcm(tm, tk))
    c1p = _round_up(h_c, 128)
    c2p = _round_up(out_c, 128)

    adj_bf16 = gcn_normalized_adjacency_padded(edge_index, n, n_pad, jnp.bfloat16)

    x_p = jnp.pad(x, ((0, n_pad - n), (0, 0)))
    w1_p = jnp.pad(w1, ((0, 0), (0, c1p - h_c)))
    b1_p = jnp.pad(b1.reshape(1, -1), ((0, 0), (0, c1p - h_c)))
    w2_p = jnp.pad(w2, ((0, c1p - h_c), (0, c2p - out_c))).astype(jnp.bfloat16)
    b2_p = jnp.pad(b2.reshape(1, -1), ((0, 0), (0, c2p - out_c)))

    # Feature projections are O(N*C*H) -- negligible next to the O(N^2)
    # aggregation -- so they run in plain JAX and feed the kernel in bf16.
    xw1 = (x_p @ w1_p).astype(jnp.bfloat16)
    # Layer 1 emits bf16 directly (halves writeback + the h re-read below).
    h = gcn_agg_relu(adj_bf16, xw1, b1_p, tm=tm, tk=tk, out_dtype=jnp.bfloat16)
    # NOTE: padded rows of h equal relu(b1) (nonzero); harmless because the
    # padded adjacency columns are zero, so they never reach the sliced output.

    xw2 = (h @ w2_p).astype(jnp.bfloat16)
    z = gcn_agg_relu(adj_bf16, xw2, b2_p, tm=tm, tk=tk, out_dtype=jnp.float32)

    return z[:n, :out_c]


def gae_reference(x, edge_index, w1, b1, w2, b2):
    n = x.shape[0]
    adj = gcn_normalized_adjacency_padded(edge_index, n, n, jnp.float32)
    h = jnp.maximum(adj @ (x @ w1) + b1, 0.0)
    z = jnp.maximum(adj @ (h @ w2) + b2, 0.0)
    return z


if __name__ == "__main__":
    key = jax.random.PRNGKey(0)

    num_nodes = 8
    in_channels = 4
    hidden_channels = 32
    out_channels = 16

    k_x, k_w1, k_b1, k_w2, k_b2 = jax.random.split(key, 5)

    # Node features
    x = jax.random.normal(k_x, (num_nodes, in_channels), jnp.float32)

    # Small deterministic ring graph (undirected: both directions listed)
    idx = jnp.arange(num_nodes)
    src = jnp.concatenate([idx, (idx + 1) % num_nodes])
    dst = jnp.concatenate([(idx + 1) % num_nodes, idx])
    edge_index = jnp.stack([src, dst])                      # (2, 16)

    # Deterministic parameter init (GCNConv: weight [in, out], bias [out])
    w1 = jax.random.normal(k_w1, (in_channels, hidden_channels), jnp.float32) * 0.1
    b1 = jax.random.normal(k_b1, (1, hidden_channels), jnp.float32) * 0.1
    w2 = jax.random.normal(k_w2, (hidden_channels, out_channels), jnp.float32) * 0.1
    b2 = jax.random.normal(k_b2, (1, out_channels), jnp.float32) * 0.1

    z = gae_forward_pallas(x, edge_index, w1, b1, w2, b2)
    jax.block_until_ready(z)

    z_ref = gae_reference(x, edge_index, w1, b1, w2, b2)
    assert z.shape == (num_nodes, out_channels)
    # bf16 adjacency / projected features / hidden => relaxed tolerance vs f32
    assert jnp.allclose(z, z_ref, atol=2e-2, rtol=2e-2), (
        float(jnp.max(jnp.abs(z - z_ref)))
    )

    print("KERNEL_OK")
</pallas_src>

<mosaic_0001>
module attributes {stable_mosaic.version = 11 : i64} {
  func.func @_gcn_agg_relu_kernel(%arg0: i32, %arg1: i32, %arg2: memref<512x512xbf16, #tpu.memory_space<vmem>>, %arg3: memref<512x128xbf16, #tpu.memory_space<vmem>>, %arg4: memref<1x128xf32, #tpu.memory_space<vmem>>, %arg5: memref<512x128xbf16, #tpu.memory_space<vmem>>, %arg6: memref<512x128xf32, #tpu.memory_space<vmem>>) attributes {dimension_semantics = [#tpu.dimension_semantics<parallel>, #tpu.dimension_semantics<arbitrary>], iteration_bounds = array<i64: 1, 1>, scalar_prefetch = 0 : i64, scratch_operands = 1 : i64, tpu.core_type = #tpu.core_type<tc>, window_params = [{transform_indices = @transform_0, window_bounds = array<i64: 512, 512>}, {pipeline_mode = #tpu.pipeline_mode<synchronous>, transform_indices = @transform_1, window_bounds = array<i64: 512, 128>}, {pipeline_mode = #tpu.pipeline_mode<synchronous>, transform_indices = @transform_2, window_bounds = array<i64: 1, 128>}, {transform_indices = @transform_3, window_bounds = array<i64: 512, 128>}]} {
    %c0_i32 = arith.constant 0 : i32
    %0 = arith.cmpi eq, %arg1, %c0_i32 : i32
    %1 = arith.extui %0 : i1 to i32
    %c0_i32_0 = arith.constant 0 : i32
    %2 = arith.cmpi ne, %1, %c0_i32_0 : i32
    scf.if %2 {
      %cst_9 = arith.constant 0.000000e+00 : f32
      %15 = vector.broadcast %cst_9 : f32 to vector<512x128xf32>
      %c0_10 = arith.constant 0 : index
      %c0_11 = arith.constant 0 : index
      %16 = vector.load %arg6[%c0_10, %c0_11] : memref<512x128xf32, #tpu.memory_space<vmem>>, vector<512x128xf32>
      tpu.vector_store %arg6[%c0_10, %c0_11], %15 {strides = array<i32>} : memref<512x128xf32, #tpu.memory_space<vmem>>, vector<512x128xf32>,
    } else {
    }
    %c512_i32 = arith.constant 512 : i32
    %3 = arith.muli %arg1, %c512_i32 : i32
    %4 = tpu.assume_multiple %3, 512 : i32
    %c0 = arith.constant 0 : index
    %c0_1 = arith.constant 0 : index
    %5 = vector.load %arg6[%c0, %c0_1] : memref<512x128xf32, #tpu.memory_space<vmem>>, vector<512x128xf32>
    %c0_2 = arith.constant 0 : index
    %c0_3 = arith.constant 0 : index
    %6 = vector.load %arg2[%c0_2, %c0_3] : memref<512x512xbf16, #tpu.memory_space<vmem>>, vector<512x512xbf16>
    %7 = arith.index_cast %4 : i32 to index
    %c0_4 = arith.constant 0 : index
    %8 = vector.load %arg3[%7, %c0_4] : memref<512x128xbf16, #tpu.memory_space<vmem>>, vector<512x128xbf16>
    %cst = arith.constant dense<0.000000e+00> : vector<512x128xf32>
    %9 = tpu.matmul %6, %8, %cst {dimension_numbers = #tpu.dot_dimension_numbers<[1], [0], [0], [1], [0, 0, 1, 1], [], []>} : vector<512x512xbf16>, vector<512x128xbf16>, vector<512x128xf32> -> vector<512x128xf32>
    %10 = arith.addf %5, %9 : vector<512x128xf32>
    %c0_5 = arith.constant 0 : index
    %c0_6 = arith.constant 0 : index
    %11 = vector.load %arg6[%c0_5, %c0_6] : memref<512x128xf32, #tpu.memory_space<vmem>>, vector<512x128xf32>
    tpu.vector_store %arg6[%c0_5, %c0_6], %10 {strides = array<i32>} : memref<512x128xf32, #tpu.memory_space<vmem>>, vector<512x128xf32>,
    %c0_i32_7 = arith.constant 0 : i32
    %12 = arith.cmpi eq, %arg1, %c0_i32_7 : i32
    %13 = arith.extui %12 : i1 to i32
    %c0_i32_8 = arith.constant 0 : i32
    %14 = arith.cmpi ne, %13, %c0_i32_8 : i32
    scf.if %14 {
      %c0_9 = arith.constant 0 : index
      %c0_10 = arith.constant 0 : index
      %15 = vector.load %arg6[%c0_9, %c0_10] : memref<512x128xf32, #tpu.memory_space<vmem>>, vector<512x128xf32>
      %c0_11 = arith.constant 0 : index
      %c0_12 = arith.constant 0 : index
      %16 = vector.load %arg4[%c0_11, %c0_12] : memref<1x128xf32, #tpu.memory_space<vmem>>, vector<1x128xf32>
      %17 = vector.broadcast %16 : vector<1x128xf32> to vector<512x128xf32>
      %18 = arith.addf %15, %17 : vector<512x128xf32>
      %cst_13 = arith.constant 0.000000e+00 : f32
      %19 = vector.broadcast %cst_13 : f32 to vector<512x128xf32>
      %20 = arith.maximumf %18, %19 : vector<512x128xf32>
      %21 = arith.truncf %20 : vector<512x128xf32> to vector<512x128xbf16>
      %c0_14 = arith.constant 0 : index
      %c0_15 = arith.constant 0 : index
      %22 = vector.load %arg5[%c0_14, %c0_15] : memref<512x128xbf16, #tpu.memory_space<vmem>>, vector<512x128xbf16>
      tpu.vector_store %arg5[%c0_14, %c0_15], %21 {strides = array<i32>} : memref<512x128xbf16, #tpu.memory_space<vmem>>, vector<512x128xbf16>,
    } else {
    }
    return
  }
  func.func @transform_0(%arg0: i32, %arg1: i32) -> (i32, i32) {
    %c0_i32 = arith.constant 0 : i32
    return %arg0, %arg1 : i32, i32
  }
  func.func @transform_1(%arg0: i32, %arg1: i32) -> (i32, i32) {
    %c0_i32 = arith.constant 0 : i32
    %c0_i32_0 = arith.constant 0 : i32
    %c0_i32_1 = arith.constant 0 : i32
    return %c0_i32, %c0_i32_0 : i32, i32
  }
  func.func @transform_2(%arg0: i32, %arg1: i32) -> (i32, i32) {
    %c0_i32 = arith.constant 0 : i32
    %c0_i32_0 = arith.constant 0 : i32
    %c0_i32_1 = arith.constant 0 : i32
    return %c0_i32, %c0_i32_0 : i32, i32
  }
  func.func @transform_3(%arg0: i32, %arg1: i32) -> (i32, i32) {
    %c0_i32 = arith.constant 0 : i32
    %c0_i32_0 = arith.constant 0 : i32
    return %arg0, %c0_i32 : i32, i32
  }
}

</mosaic_0001>

<bundles_post_ra>
// kernel: tpu_custom_call.1
= control target key start
LH: loop header
LB: loop body
LE: loop exit
PB: predicated region body
PF: predicated region fallthrough
CT: control target
= control target key end

     0   :  { %8 = vsyncpa [#allocation4], 0  ;;  %s3408_s0 = inlined_call_operand.hbm [shape: bf16[512,512], index: 0, kind: input, shape index: {}]   ;;  %s3409_s1 = inlined_call_operand.hbm [shape: bf16[512,128], index: 1, kind: input, shape index: {}]   ;;  %s3410_s2 = inlined_call_operand.vmem [shape: f32[1,128], index: 2, kind: input, shape index: {}]   ;;  %s3411_s3 = inlined_call_operand.hbm [shape: bf16[512,128], index: 3, kind: output, shape index: {}]  }
   0x1   :  { %9 = vsyncpa [#allocation7], 0 }
   0x2   :  { %10 = vsyncpa [#allocation5], 0  ;;  %s3238_s12 = smov [#allocation3]   ;;  %s3166_s16 = scalar_lea.hbm %s3408_s0, 16384 }
   0x3   :  { %s16_s13 = sshll.u32 %s3238_s12, 4  ;;  %p3167_p0 = scmp.ne.s32.totalorder %s3408_s0, %s3166_s16  ;;  %s17_s13 = int_to_ptr.vmem [resolvable:$true] %s16_s13 }
   0x4   :  { %p3170_p1 = scmp.lt.u32.totalorder %s3166_s16, %s3408_s0 }
   0x6   :  { %p3172_p2 = pnand %p3170_p1, %p3167_p0 }
   0x8   :  { %3175 = shalt.err (!%p3172_p2)
}
   0x9   :  { %s3176_s21 = scalar_lea.vmem %s17_s13, 16384  ;;  %p3181_p4 = scmp.lt.s32.totalorder %s17_s13, %s17_s13 }
   0xa   :  { %p3177_p3 = scmp.ne.s32.totalorder %s17_s13, %s3176_s21  ;;  %p3182_p5 = scmp.lt.s32.totalorder %s3176_s21, %s3176_s21 }
   0xc   :  { %p3183_p6 = por %p3182_p5, %p3181_p4 }
   0xe   :  { %p3184_p7 = pnand %p3183_p6, %p3177_p3 }
  0x10   :  { %3187 = shalt.err (!%p3184_p7)
}
  0x11   :  { %s3239_s22 = smov 256   ;;  %s3240_s23 = smov 16  }
  0x12   :  { %22 = dma.hbm_to_vmem [thread:$0]  %s3408_s0, 16384, %s17_s13, [#allocation4], %s3239_s22, %s3239_s22, %s3240_s23  }
  0x13   :  { %s3241_s26 = smov [#allocation6]   ;;  %s3188_s30 = scalar_lea.hbm %s3409_s1, 4096 }
  0x14   :  { %s28_s27 = sshll.u32 %s3241_s26, 4  ;;  %p3189_p8 = scmp.ne.s32.totalorder %s3409_s1, %s3188_s30  ;;  %s29_s27 = int_to_ptr.vmem [resolvable:$true] %s28_s27 }
  0x15   :  { %p3192_p9 = scmp.lt.u32.totalorder %s3188_s30, %s3409_s1 }
  0x17   :  { %p3194_p10 = pnand %p3192_p9, %p3189_p8 }
  0x19   :  { %3197 = shalt.err (!%p3194_p10)
}
  0x1a   :  { %s3198_s8 = scalar_lea.vmem %s29_s27, 4096  ;;  %p3203_p12 = scmp.lt.s32.totalorder %s29_s27, %s29_s27 }
  0x1b   :  { %p3199_p11 = scmp.ne.s32.totalorder %s29_s27, %s3198_s8  ;;  %p3204_p13 = scmp.lt.s32.totalorder %s3198_s8, %s3198_s8 }
  0x1d   :  { %p3205_p0 = por %p3204_p13, %p3203_p12 }
  0x1f   :  { %p3206_p1 = pnand %p3205_p0, %p3199_p11 }
  0x21   :  { %3209 = shalt.err (!%p3206_p1)
}
  0x22   :  { %s3242_s0 = smov 64   ;;  %s3243_s9 = smov 4  }
  0x23   :  { %34 = dma.hbm_to_vmem [thread:$0]  %s3409_s1, 4096, %s29_s27, [#allocation7], %s3242_s0, %s3242_s0, %s3243_s9  }
  0x24   :  { %3232 = dma.done.wait [#allocation4], 16384  }
  0x25   :  { %3233 = vsyncadd [#allocation4], 4294950912 }
  0x26   :  { %3234 = dma.done.wait [#allocation7], 4096  }
  0x27   :  { %3235 = vsyncadd [#allocation7], 4294963200  ;;  %v3244_v0 = vmov 0   ;;  %v2941_v1 = vld [vmem:[#allocation6] sm:$0xff]   ;;  %v2943_v3 = vld [vmem:[#allocation6 + $0x8] sm:$0xff]  }
  0x28   :  { %1205 = vmatprep.subr.bf16.mxu0 %v3244_v0  ;;  %1494 = vmatprep.subr.bf16.mxu1 %v3244_v0  ;;  %v2942_v2 = vld [vmem:[#allocation6 + $0x80] sm:$0xff]   ;;  %v2944_v4 = vld [vmem:[#allocation6 + $0x88] sm:$0xff]   ;;  %v2945_v5 = vld [vmem:[#allocation6 + $0x10] sm:$0xff]  }
  0x29   :  { %1206 = vmatpush1.bf16.msra.mxu0 %v2941_v1  ;;  %1495 = vmatpush1.bf16.msra.mxu1 %v2942_v2  ;;  %v2946_v6 = vld [vmem:[#allocation6 + $0x90] sm:$0xff]   ;;  %v2947_v7 = vld [vmem:[#allocation6 + $0x18] sm:$0xff]   ;;  %v2949_v9 = vld [vmem:[#allocation6 + $0x20] sm:$0xff]  }
  0x2a   :  { %1207 = vmatprep.subr.bf16.mxu0 %v3244_v0  ;;  %1496 = vmatprep.subr.bf16.mxu1 %v3244_v0  ;;  %v2948_v8 = vld [vmem:[#allocation6 + $0x98] sm:$0xff]   ;;  %v2950_v10 = vld [vmem:[#allocation6 + $0xa0] sm:$0xff]   ;;  %v2951_v11 = vld [vmem:[#allocation6 + $0x28] sm:$0xff]  }
  0x2b   :  { %v2952_v12 = vld [vmem:[#allocation6 + $0xa8] sm:$0xff]   ;;  %v2953_v13 = vld [vmem:[#allocation6 + $0x30] sm:$0xff]   ;;  %v2955_v15 = vld [vmem:[#allocation6 + $0x38] sm:$0xff]  }
  0x2c   :  { %v2954_v14 = vld [vmem:[#allocation6 + $0xb0] sm:$0xff]   ;;  %v2956_v16 = vld [vmem:[#allocation6 + $0xb8] sm:$0xff]   ;;  %v2957_v17 = vld [vmem:[#allocation6 + $0x40] sm:$0xff]  }
  0x2d   :  { %1208 = vmatpush1.bf16.msra.mxu0 %v2943_v3  ;;  %1497 = vmatpush1.bf16.msra.mxu1 %v2944_v4  ;;  %v2958_v18 = vld [vmem:[#allocation6 + $0xc0] sm:$0xff]   ;;  %v2959_v20 = vld [vmem:[#allocation6 + $0x48] sm:$0xff]   ;;  %v2961_v23 = vld [vmem:[#allocation6 + $0x50] sm:$0xff]  }
  0x2e   :  { %1209 = vmatprep.subr.bf16.mxu0 %v3244_v0  ;;  %1498 = vmatprep.subr.bf16.mxu1 %v3244_v0  ;;  %v2975_v19 = vld [vmem:[#allocation3 + $0x4] ss:$16 sps:$4 sm:$0xff]   ;;  %v2978_v21 = vld [vmem:[#allocation3 + $0xc] ss:$16 sps:$4 sm:$0xff]   ;;  %v2973_v35 = vld [vmem:[#allocation3] ss:$16 sps:$4 sm:$0xff]  }
  0x2f   :  { %v2960_v22 = vld [vmem:[#allocation6 + $0xc8] sm:$0xff]   ;;  %1237 = vmatprep.mubr.bf16.mxu0 %v2975_v19  ;;  %1526 = vmatprep.mubr.bf16.mxu1 %v2978_v21  ;;  %v2962_v24 = vld [vmem:[#allocation6 + $0xd0] sm:$0xff]   ;;  %v2963_v25 = vld [vmem:[#allocation6 + $0x58] sm:$0xff]  }
  0x30   :  { %v2964_v26 = vld [vmem:[#allocation6 + $0xd8] sm:$0xff]   ;;  %v2965_v27 = vld [vmem:[#allocation6 + $0x60] sm:$0xff]   ;;  %v2967_v29 = vld [vmem:[#allocation6 + $0x68] sm:$0xff]  }
  0x31   :  { %1210 = vmatpush1.bf16.msra.mxu0 %v2945_v5  ;;  %1499 = vmatpush1.bf16.msra.mxu1 %v2946_v6  ;;  %v2966_v28 = vld [vmem:[#allocation6 + $0xe0] sm:$0xff]   ;;  %v2968_v30 = vld [vmem:[#allocation6 + $0xe8] sm:$0xff]   ;;  %v2969_v31 = vld [vmem:[#allocation6 + $0x70] sm:$0xff]  }
  0x32   :  { %1211 = vmatprep.subr.bf16.mxu0 %v3244_v0  ;;  %1500 = vmatprep.subr.bf16.mxu1 %v3244_v0  ;;  %v2970_v32 = vld [vmem:[#allocation6 + $0xf0] sm:$0xff]   ;;  %v2971_v33 = vld [vmem:[#allocation6 + $0x78] sm:$0xff]  }
  0x33   :  { %v2972_v34 = vld [vmem:[#allocation6 + $0xf8] sm:$0xff]   ;;  %v2979_v37 = vld [vmem:[#allocation3 + $0x24] ss:$16 sps:$4 sm:$0xff]   ;;  %v2983_v39 = vld [vmem:[#allocation3 + $0x20] ss:$16 sps:$4 sm:$0xff]  }
  0x34   :  { %v2976_v36 = vld [vmem:[#allocation3 + $0x8] ss:$16 sps:$4 sm:$0xff]   ;;  %v2981_v38 = vld [vmem:[#allocation3 + $0x2c] ss:$16 sps:$4 sm:$0xff]   ;;  %v2985_v41 = vld [vmem:[#allocation3 + $0x44] ss:$16 sps:$4 sm:$0xff]  }
  0x35   :  { %1212 = vmatpush1.bf16.msra.mxu0 %v2947_v7  ;;  %1501 = vmatpush1.bf16.msra.mxu1 %v2948_v8  ;;  %v2984_v40 = vld [vmem:[#allocation3 + $0x28] ss:$16 sps:$4 sm:$0xff]   ;;  %v2987_v42 = vld [vmem:[#allocation3 + $0x4c] ss:$16 sps:$4 sm:$0xff]   ;;  %v2989_v43 = vld [vmem:[#allocation3 + $0x40] ss:$16 sps:$4 sm:$0xff]  }
  0x36   :  { %1213 = vmatprep.subr.bf16.mxu0 %v3244_v0  ;;  %1502 = vmatprep.subr.bf16.mxu1 %v3244_v0  ;;  %v2990_v44 = vld [vmem:[#allocation3 + $0x48] ss:$16 sps:$4 sm:$0xff]   ;;  %v2991_v45 = vld [vmem:[#allocation3 + $0x64] ss:$16 sps:$4 sm:$0xff]   ;;  %v2993_v46 = vld [vmem:[#allocation3 + $0x6c] ss:$16 sps:$4 sm:$0xff]  }
  0x37   :  { %v2995_v47 = vld [vmem:[#allocation3 + $0x60] ss:$16 sps:$4 sm:$0xff]   ;;  %v2996_v48 = vld [vmem:[#allocation3 + $0x68] ss:$16 sps:$4 sm:$0xff]   ;;  %v2997_v49 = vld [vmem:[#allocation3 + $0x84] ss:$16 sps:$4 sm:$0xff]  }
  0x38   :  { %v2999_v50 = vld [vmem:[#allocation3 + $0x8c] ss:$16 sps:$4 sm:$0xff]   ;;  %v3001_v51 = vld [vmem:[#allocation3 + $0x80] ss:$16 sps:$4 sm:$0xff]   ;;  %v3002_v52 = vld [vmem:[#allocation3 + $0x88] ss:$16 sps:$4 sm:$0xff]  }
  0x39   :  { %1214 = vmatpush1.bf16.msra.mxu0 %v2949_v9  ;;  %1503 = vmatpush1.bf16.msra.mxu1 %v2950_v10  ;;  %v3003_v53 = vld [vmem:[#allocation3 + $0xa4] ss:$16 sps:$4 sm:$0xff]   ;;  %v3005_v54 = vld [vmem:[#allocation3 + $0xac] ss:$16 sps:$4 sm:$0xff]   ;;  %v3007_v55 = vld [vmem:[#allocation3 + $0xa0] ss:$16 sps:$4 sm:$0xff]  }
  0x3a   :  { %1215 = vmatprep.subr.bf16.mxu0 %v3244_v0  ;;  %1504 = vmatprep.subr.bf16.mxu1 %v3244_v0  ;;  %v3008_v56 = vld [vmem:[#allocation3 + $0xa8] ss:$16 sps:$4 sm:$0xff]   ;;  %v3009_v57 = vld [vmem:[#allocation3 + $0xc4] ss:$16 sps:$4 sm:$0xff]   ;;  %v3011_v58 = vld [vmem:[#allocation3 + $0xcc] ss:$16 sps:$4 sm:$0xff]  }
  0x3b   :  { %v3013_v59 = vld [vmem:[#allocation3 + $0xc0] ss:$16 sps:$4 sm:$0xff]   ;;  %v3014_v60 = vld [vmem:[#allocation3 + $0xc8] ss:$16 sps:$4 sm:$0xff]   ;;  %v3015_v61 = vld [vmem:[#allocation3 + $0xe4] ss:$16 sps:$4 sm:$0xff]  }
  0x3c   :  { %v3017_v62 = vld [vmem:[#allocation3 + $0xec] ss:$16 sps:$4 sm:$0xff]   ;;  %v3019_v63 = vld [vmem:[#allocation3 + $0xe0] ss:$16 sps:$4 sm:$0xff]   ;;  %v3021_v1 = vld [vmem:[#allocation3 + $0x104] ss:$16 sps:$4 sm:$0xff]  }
  0x3d   :  { %1216 = vmatpush1.bf16.msra.mxu0 %v2951_v11  ;;  %1505 = vmatpush1.bf16.msra.mxu1 %v2952_v12  ;;  %v3023_v2 = vld [vmem:[#allocation3 + $0x10c] ss:$16 sps:$4 sm:$0xff]   ;;  %v3025_v3 = vld [vmem:[#allocation3 + $0x100] ss:$16 sps:$4 sm:$0xff]   ;;  %v3026_v4 = vld [vmem:[#allocation3 + $0x108] ss:$16 sps:$4 sm:$0xff]  }
  0x3e   :  { %1217 = vmatprep.subr.bf16.mxu0 %v3244_v0  ;;  %1506 = vmatprep.subr.bf16.mxu1 %v3244_v0  ;;  %v3027_v5 = vld [vmem:[#allocation3 + $0x124] ss:$16 sps:$4 sm:$0xff]   ;;  %v3029_v6 = vld [vmem:[#allocation3 + $0x12c] ss:$16 sps:$4 sm:$0xff]   ;;  %v3031_v7 = vld [vmem:[#allocation3 + $0x120] ss:$16 sps:$4 sm:$0xff]  }
  0x3f   :  { %v3032_v8 = vld [vmem:[#allocation3 + $0x128] ss:$16 sps:$4 sm:$0xff]   ;;  %v3033_v9 = vld [vmem:[#allocation3 + $0x144] ss:$16 sps:$4 sm:$0xff]   ;;  %v3035_v10 = vld [vmem:[#allocation3 + $0x14c] ss:$16 sps:$4 sm:$0xff]  }
  0x40   :  { %v3037_v11 = vld [vmem:[#allocation3 + $0x140] ss:$16 sps:$4 sm:$0xff]   ;;  %v3038_v12 = vld [vmem:[#allocation3 + $0x148] ss:$16 sps:$4 sm:$0xff]   ;;  %v3051_v21 = vld [vmem:[#allocation3 + $0x1a4] ss:$16 sps:$4 sm:$0xff]  }
  0x41   :  { %1218 = vmatpush1.bf16.msra.mxu0 %v2953_v13  ;;  %1507 = vmatpush1.bf16.msra.mxu1 %v2954_v14  ;;  %v3039_v13 = vld [vmem:[#allocation3 + $0x164] ss:$16 sps:$4 sm:$0xff]   ;;  %v3041_v14 = vld [vmem:[#allocation3 + $0x16c] ss:$16 sps:$4 sm:$0xff]   ;;  %v3049_v19 = vld [vmem:[#allocation3 + $0x180] ss:$16 sps:$4 sm:$0xff]  }
  0x42   :  { %1219 = vmatprep.subr.bf16.mxu0 %v3244_v0  ;;  %1508 = vmatprep.subr.bf16.mxu1 %v3244_v0 }
  0x45   :  { %1220 = vmatpush1.bf16.msra.mxu0 %v2955_v15  ;;  %1509 = vmatpush1.bf16.msra.mxu1 %v2956_v16  ;;  %v3043_v15 = vld [vmem:[#allocation3 + $0x160] ss:$16 sps:$4 sm:$0xff]   ;;  %v3044_v16 = vld [vmem:[#allocation3 + $0x168] ss:$16 sps:$4 sm:$0xff]  }
  0x46   :  { %1221 = vmatprep.subr.bf16.mxu0 %v3244_v0  ;;  %1510 = vmatprep.subr.bf16.mxu1 %v3244_v0 }
  0x49   :  { %1222 = vmatpush1.bf16.msra.mxu0 %v2957_v17  ;;  %1511 = vmatpush1.bf16.msra.mxu1 %v2958_v18  ;;  %v3045_v17 = vld [vmem:[#allocation3 + $0x184] ss:$16 sps:$4 sm:$0xff]   ;;  %v3047_v18 = vld [vmem:[#allocation3 + $0x18c] ss:$16 sps:$4 sm:$0xff]  }
  0x4a   :  { %1223 = vmatprep.subr.bf16.mxu0 %v3244_v0  ;;  %1512 = vmatprep.subr.bf16.mxu1 %v3244_v0 }
  0x4d   :  { %1224 = vmatpush1.bf16.msra.mxu0 %v2959_v20  ;;  %1513 = vmatpush1.bf16.msra.mxu1 %v2960_v22  ;;  %v3050_v20 = vld [vmem:[#allocation3 + $0x188] ss:$16 sps:$4 sm:$0xff]   ;;  %v3053_v22 = vld [vmem:[#allocation3 + $0x1ac] ss:$16 sps:$4 sm:$0xff]  }
  0x4e   :  { %1225 = vmatprep.subr.bf16.mxu0 %v3244_v0  ;;  %1514 = vmatprep.subr.bf16.mxu1 %v3244_v0 }
  0x51   :  { %1226 = vmatpush1.bf16.msra.mxu0 %v2961_v23  ;;  %1515 = vmatpush1.bf16.msra.mxu1 %v2962_v24  ;;  %v3055_v23 = vld [vmem:[#allocation3 + $0x1a0] ss:$16 sps:$4 sm:$0xff]   ;;  %v3056_v24 = vld [vmem:[#allocation3 + $0x1a8] ss:$16 sps:$4 sm:$0xff]  }
  0x52   :  { %1227 = vmatprep.subr.bf16.mxu0 %v3244_v0  ;;  %1516 = vmatprep.subr.bf16.mxu1 %v3244_v0 }
  0x55   :  { %1228 = vmatpush1.bf16.msra.mxu0 %v2963_v25  ;;  %1517 = vmatpush1.bf16.msra.mxu1 %v2964_v26  ;;  %v3057_v25 = vld [vmem:[#allocation3 + $0x1c4] ss:$16 sps:$4 sm:$0xff]   ;;  %v3059_v26 = vld [vmem:[#allocation3 + $0x1cc] ss:$16 sps:$4 sm:$0xff]  }
  0x56   :  { %1229 = vmatprep.subr.bf16.mxu0 %v3244_v0  ;;  %1518 = vmatprep.subr.bf16.mxu1 %v3244_v0 }
  0x59   :  { %1230 = vmatpush1.bf16.msra.mxu0 %v2965_v27  ;;  %1519 = vmatpush1.bf16.msra.mxu1 %v2966_v28  ;;  %v3061_v27 = vld [vmem:[#allocation3 + $0x1c0] ss:$16 sps:$4 sm:$0xff]   ;;  %v3062_v28 = vld [vmem:[#allocation3 + $0x1c8] ss:$16 sps:$4 sm:$0xff]  }
  0x5a   :  { %1231 = vmatprep.subr.bf16.mxu0 %v3244_v0  ;;  %1520 = vmatprep.subr.bf16.mxu1 %v3244_v0 }
  0x5d   :  { %1232 = vmatpush1.bf16.msra.mxu0 %v2967_v29  ;;  %1521 = vmatpush1.bf16.msra.mxu1 %v2968_v30  ;;  %v3063_v29 = vld [vmem:[#allocation3 + $0x1e4] ss:$16 sps:$4 sm:$0xff]   ;;  %v3065_v30 = vld [vmem:[#allocation3 + $0x1ec] ss:$16 sps:$4 sm:$0xff]  }
  0x5e   :  { %1233 = vmatprep.subr.bf16.mxu0 %v3244_v0  ;;  %1522 = vmatprep.subr.bf16.mxu1 %v3244_v0 }
  0x61   :  { %1234 = vmatpush1.bf16.msra.mxu0 %v2969_v31  ;;  %1523 = vmatpush1.bf16.msra.mxu1 %v2970_v32  ;;  %v3067_v31 = vld [vmem:[#allocation3 + $0x1e0] ss:$16 sps:$4 sm:$0xff]   ;;  %v3068_v32 = vld [vmem:[#allocation3 + $0x1e8] ss:$16 sps:$4 sm:$0xff]  }
  0x62   :  { %1235 = vmatprep.subr.bf16.mxu0 %v3244_v0  ;;  %1524 = vmatprep.subr.bf16.mxu1 %v3244_v0  ;;  %v3020_v0 = vld [vmem:[#allocation3 + $0xe8] ss:$16 sps:$4 sm:$0xff]  }
  0x65   :  { %1236 = vmatpush1.bf16.msra.mxu0 %v2971_v33  ;;  %1525 = vmatpush1.bf16.msra.mxu1 %v2972_v34  ;;  %v3069_v33 = vld [vmem:[#allocation3 + $0x204] ss:$16 sps:$4 sm:$0xff]   ;;  %v3071_v34 = vld [vmem:[#allocation3 + $0x20c] ss:$16 sps:$4 sm:$0xff]  }
  0x68   :  { %1238 = vmatmul.mubr.bf16.vlgmr.msra.gmra.mrb[0].mxu0 %v2973_v35  ;;  %1527 = vmatmul.mubr.bf16.vlgmr.msra.gmra.mrb[0].mxu1 %v2976_v36  ;;  %v3073_v35 = vld [vmem:[#allocation3 + $0x200] ss:$16 sps:$4 sm:$0xff]   ;;  %v3074_v36 = vld [vmem:[#allocation3 + $0x208] ss:$16 sps:$4 sm:$0xff]  }
  0x69   :  { %1245 = vmatprep.mubr.bf16.mxu0 %v2979_v37  ;;  %1534 = vmatprep.mubr.bf16.mxu1 %v2981_v38  ;;  %v3075_v37 = vld [vmem:[#allocation3 + $0x224] ss:$16 sps:$4 sm:$0xff]   ;;  %v3077_v38 = vld [vmem:[#allocation3 + $0x22c] ss:$16 sps:$4 sm:$0xff]  }
  0x70   :  { %1246 = vmatmul.mubr.bf16.gmra.mrb[4].mxu0 %v2983_v39  ;;  %1535 = vmatmul.mubr.bf16.gmra.mrb[4].mxu1 %v2984_v40  ;;  %v3079_v39 = vld [vmem:[#allocation3 + $0x220] ss:$16 sps:$4 sm:$0xff]   ;;  %v3080_v40 = vld [vmem:[#allocation3 + $0x228] ss:$16 sps:$4 sm:$0xff]  }
  0x71   :  { %1253 = vmatprep.mubr.bf16.mxu0 %v2985_v41  ;;  %1542 = vmatprep.mubr.bf16.mxu1 %v2987_v42  ;;  %v3081_v41 = vld [vmem:[#allocation3 + $0x244] ss:$16 sps:$4 sm:$0xff]   ;;  %v3083_v42 = vld [vmem:[#allocation3 + $0x24c] ss:$16 sps:$4 sm:$0xff]  }
  0x78   :  { %1254 = vmatmul.mubr.bf16.gmra.mrb[8].mxu0 %v2989_v43  ;;  %1543 = vmatmul.mubr.bf16.gmra.mrb[8].mxu1 %v2990_v44  ;;  %v3085_v43 = vld [vmem:[#allocation3 + $0x240] ss:$16 sps:$4 sm:$0xff]   ;;  %v3086_v44 = vld [vmem:[#allocation3 + $0x248] ss:$16 sps:$4 sm:$0xff]  }
  0x79   :  { %1261 = vmatprep.mubr.bf16.mxu0 %v2991_v45  ;;  %1550 = vmatprep.mubr.bf16.mxu1 %v2993_v46  ;;  %v3087_v45 = vld [vmem:[#allocation3 + $0x264] ss:$16 sps:$4 sm:$0xff]   ;;  %v3089_v46 = vld [vmem:[#allocation3 + $0x26c] ss:$16 sps:$4 sm:$0xff]  }
  0x80   :  { %1262 = vmatmul.mubr.bf16.gmra.mrb[12].mxu0 %v2995_v47  ;;  %1551 = vmatmul.mubr.bf16.gmra.mrb[12].mxu1 %v2996_v48  ;;  %v3091_v47 = vld [vmem:[#allocation3 + $0x260] ss:$16 sps:$4 sm:$0xff]   ;;  %v3092_v48 = vld [vmem:[#allocation3 + $0x268] ss:$16 sps:$4 sm:$0xff]  }
  0x81   :  { %1269 = vmatprep.mubr.bf16.mxu0 %v2997_v49  ;;  %1558 = vmatprep.mubr.bf16.mxu1 %v2999_v50  ;;  %v3093_v49 = vld [vmem:[#allocation3 + $0x284] ss:$16 sps:$4 sm:$0xff]   ;;  %v3095_v50 = vld [vmem:[#allocation3 + $0x28c] ss:$16 sps:$4 sm:$0xff]  }
  0x88   :  { %1270 = vmatmul.mubr.bf16.gmra.mrb[16].mxu0 %v3001_v51  ;;  %1559 = vmatmul.mubr.bf16.gmra.mrb[16].mxu1 %v3002_v52  ;;  %v3097_v51 = vld [vmem:[#allocation3 + $0x280] ss:$16 sps:$4 sm:$0xff]   ;;  %v3098_v52 = vld [vmem:[#allocation3 + $0x288] ss:$16 sps:$4 sm:$0xff]  }
  0x89   :  { %1277 = vmatprep.mubr.bf16.mxu0 %v3003_v53  ;;  %1566 = vmatprep.mubr.bf16.mxu1 %v3005_v54  ;;  %v3099_v53 = vld [vmem:[#allocation3 + $0x2a4] ss:$16 sps:$4 sm:$0xff]   ;;  %v3101_v54 = vld [vmem:[#allocation3 + $0x2ac] ss:$16 sps:$4 sm:$0xff]  }
  0x90   :  { %1278 = vmatmul.mubr.bf16.gmra.mrb[20].mxu0 %v3007_v55  ;;  %1567 = vmatmul.mubr.bf16.gmra.mrb[20].mxu1 %v3008_v56  ;;  %v3103_v55 = vld [vmem:[#allocation3 + $0x2a0] ss:$16 sps:$4 sm:$0xff]   ;;  %v3104_v56 = vld [vmem:[#allocation3 + $0x2a8] ss:$16 sps:$4 sm:$0xff]  }
  0x91   :  { %1285 = vmatprep.mubr.bf16.mxu0 %v3009_v57  ;;  %1574 = vmatprep.mubr.bf16.mxu1 %v3011_v58  ;;  %v3105_v57 = vld [vmem:[#allocation3 + $0x2c4] ss:$16 sps:$4 sm:$0xff]   ;;  %v3107_v58 = vld [vmem:[#allocation3 + $0x2cc] ss:$16 sps:$4 sm:$0xff]  }
  0x98   :  { %1286 = vmatmul.mubr.bf16.gmra.mrb[24].mxu0 %v3013_v59  ;;  %1575 = vmatmul.mubr.bf16.gmra.mrb[24].mxu1 %v3014_v60  ;;  %v3109_v59 = vld [vmem:[#allocation3 + $0x2c0] ss:$16 sps:$4 sm:$0xff]   ;;  %v3110_v60 = vld [vmem:[#allocation3 + $0x2c8] ss:$16 sps:$4 sm:$0xff]  }
  0x99   :  { %1293 = vmatprep.mubr.bf16.mxu0 %v3015_v61  ;;  %1582 = vmatprep.mubr.bf16.mxu1 %v3017_v62  ;;  %v3111_v61 = vld [vmem:[#allocation3 + $0x2e4] ss:$16 sps:$4 sm:$0xff]   ;;  %v3113_v62 = vld [vmem:[#allocation3 + $0x2ec] ss:$16 sps:$4 sm:$0xff]  }
  0xa0   :  { %1294 = vmatmul.mubr.bf16.gmra.mrb[28].mxu0 %v3019_v63  ;;  %1583 = vmatmul.mubr.bf16.gmra.mrb[28].mxu1 %v3020_v0  ;;  %v3115_v63 = vld [vmem:[#allocation3 + $0x2e0] ss:$16 sps:$4 sm:$0xff]   ;;  %v3116_v0 = vld [vmem:[#allocation3 + $0x2e8] ss:$16 sps:$4 sm:$0xff]  }
  0xa1   :  { %1301 = vmatprep.mubr.bf16.mxu0 %v3021_v1  ;;  %1590 = vmatprep.mubr.bf16.mxu1 %v3023_v2  ;;  %v3117_v1 = vld [vmem:[#allocation3 + $0x304] ss:$16 sps:$4 sm:$0xff]   ;;  %v3119_v2 = vld [vmem:[#allocation3 + $0x30c] ss:$16 sps:$4 sm:$0xff]  }
  0xa8   :  { %1302 = vmatmul.mubr.bf16.gmra.mrb[32].mxu0 %v3025_v3  ;;  %1591 = vmatmul.mubr.bf16.gmra.mrb[32].mxu1 %v3026_v4  ;;  %v3121_v3 = vld [vmem:[#allocation3 + $0x300] ss:$16 sps:$4 sm:$0xff]   ;;  %v3122_v4 = vld [vmem:[#allocation3 + $0x308] ss:$16 sps:$4 sm:$0xff]  }
  0xa9   :  { %1309 = vmatprep.mubr.bf16.mxu0 %v3027_v5  ;;  %1598 = vmatprep.mubr.bf16.mxu1 %v3029_v6  ;;  %v3123_v5 = vld [vmem:[#allocation3 + $0x324] ss:$16 sps:$4 sm:$0xff]   ;;  %v3125_v6 = vld [vmem:[#allocation3 + $0x32c] ss:$16 sps:$4 sm:$0xff]  }
  0xb0   :  { %1310 = vmatmul.mubr.bf16.gmra.mrb[36].mxu0 %v3031_v7  ;;  %1599 = vmatmul.mubr.bf16.gmra.mrb[36].mxu1 %v3032_v8  ;;  %v3127_v7 = vld [vmem:[#allocation3 + $0x320] ss:$16 sps:$4 sm:$0xff]   ;;  %v3128_v8 = vld [vmem:[#allocation3 + $0x328] ss:$16 sps:$4 sm:$0xff]  }
  0xb1   :  { %1317 = vmatprep.mubr.bf16.mxu0 %v3033_v9  ;;  %1606 = vmatprep.mubr.bf16.mxu1 %v3035_v10  ;;  %v3129_v9 = vld [vmem:[#allocation3 + $0x344] ss:$16 sps:$4 sm:$0xff]   ;;  %v3131_v10 = vld [vmem:[#allocation3 + $0x34c] ss:$16 sps:$4 sm:$0xff]  }
  0xb8   :  { %1318 = vmatmul.mubr.bf16.gmra.mrb[40].mxu0 %v3037_v11  ;;  %1607 = vmatmul.mubr.bf16.gmra.mrb[40].mxu1 %v3038_v12  ;;  %v3133_v11 = vld [vmem:[#allocation3 + $0x340] ss:$16 sps:$4 sm:$0xff]   ;;  %v3134_v12 = vld [vmem:[#allocation3 + $0x348] ss:$16 sps:$4 sm:$0xff]  }
  0xb9   :  { %1325 = vmatprep.mubr.bf16.mxu0 %v3039_v13  ;;  %1614 = vmatprep.mubr.bf16.mxu1 %v3041_v14  ;;  %v3135_v13 = vld [vmem:[#allocation3 + $0x364] ss:$16 sps:$4 sm:$0xff]   ;;  %v3137_v14 = vld [vmem:[#allocation3 + $0x36c] ss:$16 sps:$4 sm:$0xff]  }
  0xc0   :  { %1326 = vmatmul.mubr.bf16.gmra.mrb[44].mxu0 %v3043_v15  ;;  %1615 = vmatmul.mubr.bf16.gmra.mrb[44].mxu1 %v3044_v16 }
  0xc1   :  { %1333 = vmatprep.mubr.bf16.mxu0 %v3045_v17  ;;  %1622 = vmatprep.mubr.bf16.mxu1 %v3047_v18  ;;  %v3328_v17 = vld [vmem:[%s3410_s2] ss:$0 sm:$0xff] }
  0xc8   :  { %1334 = vmatmul.mubr.bf16.gmra.mrb[48].mxu0 %v3049_v19  ;;  %1623 = vmatmul.mubr.bf16.gmra.mrb[48].mxu1 %v3050_v20  ;;  %v3139_v19 = vld [vmem:[#allocation3 + $0x360] ss:$16 sps:$4 sm:$0xff]  }
  0xc9   :  { %1341 = vmatprep.mubr.bf16.mxu0 %v3051_v21  ;;  %1630 = vmatprep.mubr.bf16.mxu1 %v3053_v22 }
  0xd0   :  { %1342 = vmatmul.mubr.bf16.gmra.mrb[52].mxu0 %v3055_v23  ;;  %1631 = vmatmul.mubr.bf16.gmra.mrb[52].mxu1 %v3056_v24  ;;  %v3140_v23 = vld [vmem:[#allocation3 + $0x368] ss:$16 sps:$4 sm:$0xff]   ;;  %v3141_v24 = vld [vmem:[#allocation3 + $0x384] ss:$16 sps:$4 sm:$0xff]  }
  0xd1   :  { %1349 = vmatprep.mubr.bf16.mxu0 %v3057_v25  ;;  %1638 = vmatprep.mubr.bf16.mxu1 %v3059_v26 }
  0xd8   :  { %1350 = vmatmul.mubr.bf16.gmra.mrb[56].mxu0 %v3061_v27  ;;  %1639 = vmatmul.mubr.bf16.gmra.mrb[56].mxu1 %v3062_v28  ;;  %v3143_v27 = vld [vmem:[#allocation3 + $0x38c] ss:$16 sps:$4 sm:$0xff]  }
  0xd9   :  { %1357 = vmatprep.mubr.bf16.mxu0 %v3063_v29  ;;  %1646 = vmatprep.mubr.bf16.mxu1 %v3065_v30 }
  0xe0   :  { %1358 = vmatmul.mubr.bf16.gmra.mrb[60].mxu0 %v3067_v31  ;;  %1647 = vmatmul.mubr.bf16.gmra.mrb[60].mxu1 %v3068_v32 }
  0xe1   :  { %1365 = vmatprep.mubr.bf16.mxu0 %v3069_v33  ;;  %1654 = vmatprep.mubr.bf16.mxu1 %v3071_v34 }
  0xe8   :  { %1366 = vmatmul.mubr.bf16.gmra.mrb[64].mxu0 %v3073_v35  ;;  %1655 = vmatmul.mubr.bf16.gmra.mrb[64].mxu1 %v3074_v36 }
  0xe9   :  { %1373 = vmatprep.mubr.bf16.mxu0 %v3075_v37  ;;  %1662 = vmatprep.mubr.bf16.mxu1 %v3077_v38  ;;  %v3145_v37 = vld [vmem:[#allocation3 + $0x380] ss:$16 sps:$4 sm:$0xff]  }
  0xf0   :  { %1374 = vmatmul.mubr.bf16.gmra.mrb[68].mxu0 %v3079_v39  ;;  %1663 = vmatmul.mubr.bf16.gmra.mrb[68].mxu1 %v3080_v40 }
  0xf1   :  { %1381 = vmatprep.mubr.bf16.mxu0 %v3081_v41  ;;  %1670 = vmatprep.mubr.bf16.mxu1 %v3083_v42  ;;  %v3146_v42 = vld [vmem:[#allocation3 + $0x388] ss:$16 sps:$4 sm:$0xff]  }
  0xf8   :  { %1382 = vmatmul.mubr.bf16.gmra.mrb[72].mxu0 %v3085_v43  ;;  %1671 = vmatmul.mubr.bf16.gmra.mrb[72].mxu1 %v3086_v44  ;;  %v3147_v43 = vld [vmem:[#allocation3 + $0x3a4] ss:$16 sps:$4 sm:$0xff]  }
  0xf9   :  { %1389 = vmatprep.mubr.bf16.mxu0 %v3087_v45  ;;  %1678 = vmatprep.mubr.bf16.mxu1 %v3089_v46  ;;  %v3149_v46 = vld [vmem:[#allocation3 + $0x3ac] ss:$16 sps:$4 sm:$0xff]  }
 0x100   :  { %1390 = vmatmul.mubr.bf16.gmra.mrb[76].mxu0 %v3091_v47  ;;  %1679 = vmatmul.mubr.bf16.gmra.mrb[76].mxu1 %v3092_v48 }
 0x101   :  { %1397 = vmatprep.mubr.bf16.mxu0 %v3093_v49  ;;  %1686 = vmatprep.mubr.bf16.mxu1 %v3095_v50 }
 0x108   :  { %1398 = vmatmul.mubr.bf16.gmra.mrb[80].mxu0 %v3097_v51  ;;  %1687 = vmatmul.mubr.bf16.gmra.mrb[80].mxu1 %v3098_v52 }
 0x109   :  { %1405 = vmatprep.mubr.bf16.mxu0 %v3099_v53  ;;  %1694 = vmatprep.mubr.bf16.mxu1 %v3101_v54 }
 0x110   :  { %1406 = vmatmul.mubr.bf16.gmra.mrb[84].mxu0 %v3103_v55  ;;  %1695 = vmatmul.mubr.bf16.gmra.mrb[84].mxu1 %v3104_v56  ;;  %v3151_v56 = vld [vmem:[#allocation3 + $0x3a0] ss:$16 sps:$4 sm:$0xff]  }
 0x111   :  { %1413 = vmatprep.mubr.bf16.mxu0 %v3105_v57  ;;  %1702 = vmatprep.mubr.bf16.mxu1 %v3107_v58 }
 0x118   :  { %1414 = vmatmul.mubr.bf16.gmra.mrb[88].mxu0 %v3109_v59  ;;  %1703 = vmatmul.mubr.bf16.gmra.mrb[88].mxu1 %v3110_v60 }
 0x119   :  { %1421 = vmatprep.mubr.bf16.mxu0 %v3111_v61  ;;  %1710 = vmatprep.mubr.bf16.mxu1 %v3113_v62  ;;  %v3152_v61 = vld [vmem:[#allocation3 + $0x3a8] ss:$16 sps:$4 sm:$0xff]   ;;  %v3153_v62 = vld [vmem:[#allocation3 + $0x3c4] ss:$16 sps:$4 sm:$0xff]  }
 0x120   :  { %1422 = vmatmul.mubr.bf16.gmra.mrb[92].mxu0 %v3115_v63  ;;  %1711 = vmatmul.mubr.bf16.gmra.mrb[92].mxu1 %v3116_v0 }
 0x121   :  { %1429 = vmatprep.mubr.bf16.mxu0 %v3117_v1  ;;  %1718 = vmatprep.mubr.bf16.mxu1 %v3119_v2  ;;  %v3155_v1 = vld [vmem:[#allocation3 + $0x3cc] ss:$16 sps:$4 sm:$0xff]  }
 0x128   :  { %1430 = vmatmul.mubr.bf16.gmra.mrb[96].mxu0 %v3121_v3  ;;  %1719 = vmatmul.mubr.bf16.gmra.mrb[96].mxu1 %v3122_v4 }
 0x129   :  { %1437 = vmatprep.mubr.bf16.mxu0 %v3123_v5  ;;  %1726 = vmatprep.mubr.bf16.mxu1 %v3125_v6 }
 0x130   :  { %1438 = vmatmul.mubr.bf16.gmra.mrb[100].mxu0 %v3127_v7  ;;  %1727 = vmatmul.mubr.bf16.gmra.mrb[100].mxu1 %v3128_v8 }
 0x131   :  { %1445 = vmatprep.mubr.bf16.mxu0 %v3129_v9  ;;  %1734 = vmatprep.mubr.bf16.mxu1 %v3131_v10 }
 0x138   :  { %1446 = vmatmul.mubr.bf16.gmra.mrb[104].mxu0 %v3133_v11  ;;  %1735 = vmatmul.mubr.bf16.gmra.mrb[104].mxu1 %v3134_v12  ;;  %v3157_v11 = vld [vmem:[#allocation3 + $0x3c0] ss:$16 sps:$4 sm:$0xff]  }
 0x139   :  { %1453 = vmatprep.mubr.bf16.mxu0 %v3135_v13  ;;  %1742 = vmatprep.mubr.bf16.mxu1 %v3137_v14 }
 0x13b   :  { %v1239_v15 = vpop.f32.mrb[0].mxu0  ;;  %v1528_v16 = vpop.f32.mrb[0].mxu1 }
 0x13c   :  { %v1241_v18 = vpop.f32.mrb[1].mxu0  ;;  %v1529_v20 = vadd.f32 %v1528_v16, %v1239_v15  ;;  %v1530_v21 = vpop.f32.mrb[1].mxu1  ;;  %v3158_v16 = vld [vmem:[#allocation3 + $0x3c8] ss:$16 sps:$4 sm:$0xff]  }
 0x13d   :  { %v1242_v22 = vpop.f32.mrb[2].mxu0  ;;  %v1531_v25 = vpop.f32.mrb[2].mxu1  ;;  %v3159_v18 = vld [vmem:[#allocation3 + $0x3e4] ss:$16 sps:$4 sm:$0xff]   ;;  %v3161_v21 = vld [vmem:[#allocation3 + $0x3ec] ss:$16 sps:$4 sm:$0xff]  }
 0x13e   :  { %v1244_v26 = vpop.f32.mrb[3].mxu0  ;;  %v1985_v28 = vadd.f32 %v3328_v17, %v1529_v20  ;;  %v1532_v29 = vadd.f32 %v1531_v25, %v1242_v22  ;;  %v1533_v30 = vpop.f32.mrb[3].mxu1 }
 0x140   :  { %1454 = vmatmul.mubr.bf16.gmra.mrb[108].mxu0 %v3139_v19  ;;  %v1986_v31 = vadd.f32 %v3328_v17, %v1532_v29  ;;  %1743 = vmatmul.mubr.bf16.gmra.mrb[108].mxu1 %v3140_v23  ;;  %v2049_v32 = vmax.f32 %v1985_v28, 0.0 }
 0x141   :  { %1461 = vmatprep.mubr.bf16.mxu0 %v3141_v24  ;;  %1750 = vmatprep.mubr.bf16.mxu1 %v3143_v27 }
 0x142   :  { %v2050_v33 = vmax.f32 %v1986_v31, 0.0  ;;  %v3163_v31 = vld [vmem:[#allocation3 + $0x3e0] ss:$16 sps:$4 sm:$0xff]  }
 0x143   :  { %v1247_v34 = vpop.f32.mrb[4].mxu0  ;;  %v1536_v35 = vpop.f32.mrb[4].mxu1 }
 0x144   :  { %v1249_v36 = vpop.f32.mrb[5].mxu0  ;;  %v2745_v38 = vpack.c.bf16 %v2050_v33, %v2049_v32  ;;  %v1537_v39 = vadd.f32 %v1536_v35, %v1247_v34  ;;  %v1538_v40 = vpop.f32.mrb[5].mxu1 }
 0x145   :  { %v1250_v41 = vpop.f32.mrb[6].mxu0  ;;  %v1539_v44 = vpop.f32.mrb[6].mxu1  ;;  %v3164_v36 = vld [vmem:[#allocation3 + $0x3e8] ss:$16 sps:$4 sm:$0xff]  }
 0x146   :  { %v1252_v45 = vpop.f32.mrb[7].mxu0  ;;  %2746 = vst [vmem:[#allocation8] sm:$0xff] %v2745_v38   ;;  %v1987_v47 = vadd.f32 %v3328_v17, %v1537_v39  ;;  %v1540_v48 = vadd.f32 %v1539_v44, %v1250_v41  ;;  %v1541_v49 = vpop.f32.mrb[7].mxu1 }
 0x148   :  { %1462 = vmatmul.mubr.bf16.gmra.mrb[112].mxu0 %v3145_v37  ;;  %v1988_v50 = vadd.f32 %v3328_v17, %v1540_v48  ;;  %1751 = vmatmul.mubr.bf16.gmra.mrb[112].mxu1 %v3146_v42  ;;  %v2051_v51 = vmax.f32 %v1987_v47, 0.0 }
 0x149   :  { %1469 = vmatprep.mubr.bf16.mxu0 %v3147_v43  ;;  %1758 = vmatprep.mubr.bf16.mxu1 %v3149_v46 }
 0x14a   :  { %v2052_v52 = vmax.f32 %v1988_v50, 0.0 }
 0x14b   :  { %v1255_v53 = vpop.f32.mrb[8].mxu0  ;;  %v1544_v54 = vpop.f32.mrb[8].mxu1 }
 0x14c   :  { %v1257_v55 = vpop.f32.mrb[9].mxu0  ;;  %v2750_v57 = vpack.c.bf16 %v2052_v52, %v2051_v51  ;;  %v1545_v58 = vadd.f32 %v1544_v54, %v1255_v53  ;;  %v1546_v59 = vpop.f32.mrb[9].mxu1 }
 0x14d   :  { %v1258_v60 = vpop.f32.mrb[10].mxu0  ;;  %v1547_v63 = vpop.f32.mrb[10].mxu1 }
 0x14e   :  { %v1260_v0 = vpop.f32.mrb[11].mxu0  ;;  %2902 = vst [vmem:[#allocation8 + $0x8] sm:$0xff] %v2750_v57   ;;  %v1989_v2 = vadd.f32 %v3328_v17, %v1545_v58  ;;  %v1548_v3 = vadd.f32 %v1547_v63, %v1258_v60  ;;  %v1549_v4 = vpop.f32.mrb[11].mxu1 }
 0x150   :  { %1470 = vmatmul.mubr.bf16.gmra.mrb[116].mxu0 %v3151_v56  ;;  %v1990_v5 = vadd.f32 %v3328_v17, %v1548_v3  ;;  %1759 = vmatmul.mubr.bf16.gmra.mrb[116].mxu1 %v3152_v61  ;;  %v2053_v6 = vmax.f32 %v1989_v2, 0.0 }
 0x151   :  { %1477 = vmatprep.mubr.bf16.mxu0 %v3153_v62  ;;  %1766 = vmatprep.mubr.bf16.mxu1 %v3155_v1 }
 0x152   :  { %v2054_v7 = vmax.f32 %v1990_v5, 0.0 }
 0x153   :  { %v1263_v8 = vpop.f32.mrb[12].mxu0  ;;  %v1552_v9 = vpop.f32.mrb[12].mxu1 }
 0x154   :  { %v1265_v10 = vpop.f32.mrb[13].mxu0  ;;  %v2755_v12 = vpack.c.bf16 %v2054_v7, %v2053_v6  ;;  %v1553_v13 = vadd.f32 %v1552_v9, %v1263_v8  ;;  %v1554_v14 = vpop.f32.mrb[13].mxu1 }
 0x155   :  { %v1266_v15 = vpop.f32.mrb[14].mxu0  ;;  %v1555_v19 = vpop.f32.mrb[14].mxu1 }
 0x156   :  { %v1268_v20 = vpop.f32.mrb[15].mxu0  ;;  %2903 = vst [vmem:[#allocation8 + $0x10] sm:$0xff] %v2755_v12   ;;  %v1991_v22 = vadd.f32 %v3328_v17, %v1553_v13  ;;  %v1556_v23 = vadd.f32 %v1555_v19, %v1266_v15  ;;  %v1557_v24 = vpop.f32.mrb[15].mxu1 }
 0x158   :  { %1478 = vmatmul.mubr.bf16.gmra.mrb[120].mxu0 %v3157_v11  ;;  %v1992_v25 = vadd.f32 %v3328_v17, %v1556_v23  ;;  %1767 = vmatmul.mubr.bf16.gmra.mrb[120].mxu1 %v3158_v16  ;;  %v2055_v26 = vmax.f32 %v1991_v22, 0.0 }
 0x159   :  { %1485 = vmatprep.mubr.bf16.mxu0 %v3159_v18  ;;  %1774 = vmatprep.mubr.bf16.mxu1 %v3161_v21 }
 0x15a   :  { %v2056_v27 = vmax.f32 %v1992_v25, 0.0 }
 0x15b   :  { %v1271_v28 = vpop.f32.mrb[16].mxu0  ;;  %v1560_v29 = vpop.f32.mrb[16].mxu1 }
 0x15c   :  { %v1273_v30 = vpop.f32.mrb[17].mxu0  ;;  %v2760_v32 = vpack.c.bf16 %v2056_v27, %v2055_v26  ;;  %v1561_v33 = vadd.f32 %v1560_v29, %v1271_v28  ;;  %v1562_v34 = vpop.f32.mrb[17].mxu1 }
 0x15d   :  { %v1274_v35 = vpop.f32.mrb[18].mxu0  ;;  %v1563_v37 = vpop.f32.mrb[18].mxu1 }
 0x15e   :  { %v1276_v38 = vpop.f32.mrb[19].mxu0  ;;  %2904 = vst [vmem:[#allocation8 + $0x18] sm:$0xff] %v2760_v32   ;;  %v1993_v39 = vadd.f32 %v3328_v17, %v1561_v33  ;;  %v1564_v40 = vadd.f32 %v1563_v37, %v1274_v35  ;;  %v1565_v41 = vpop.f32.mrb[19].mxu1 }
 0x160   :  { %1486 = vmatmul.mubr.bf16.gmra.mrb[124].mxu0 %v3163_v31  ;;  %v1994_v42 = vadd.f32 %v3328_v17, %v1564_v40  ;;  %1775 = vmatmul.mubr.bf16.gmra.mrb[124].mxu1 %v3164_v36  ;;  %v2057_v43 = vmax.f32 %v1993_v39, 0.0 }
 0x162   :  { %v2058_v44 = vmax.f32 %v1994_v42, 0.0 }
 0x163   :  { %v1279_v45 = vpop.f32.mrb[20].mxu0  ;;  %v1568_v46 = vpop.f32.mrb[20].mxu1 }
 0x164   :  { %v1281_v47 = vpop.f32.mrb[21].mxu0  ;;  %v2765_v48 = vpack.c.bf16 %v2058_v44, %v2057_v43  ;;  %v1569_v49 = vadd.f32 %v1568_v46, %v1279_v45  ;;  %v1570_v50 = vpop.f32.mrb[21].mxu1 }
 0x165   :  { %v1282_v51 = vpop.f32.mrb[22].mxu0  ;;  %v1571_v52 = vpop.f32.mrb[22].mxu1 }
 0x166   :  { %v1284_v53 = vpop.f32.mrb[23].mxu0  ;;  %2905 = vst [vmem:[#allocation8 + $0x20] sm:$0xff] %v2765_v48   ;;  %v1995_v54 = vadd.f32 %v3328_v17, %v1569_v49  ;;  %v1572_v55 = vadd.f32 %v1571_v52, %v1282_v51  ;;  %v1573_v56 = vpop.f32.mrb[23].mxu1 }
 0x168   :  { %v1996_v57 = vadd.f32 %v3328_v17, %v1572_v55  ;;  %v2059_v58 = vmax.f32 %v1995_v54, 0.0 }
 0x16a   :  { %v2060_v59 = vmax.f32 %v1996_v57, 0.0 }
 0x16b   :  { %v1287_v60 = vpop.f32.mrb[24].mxu0  ;;  %v1576_v61 = vpop.f32.mrb[24].mxu1 }
 0x16c   :  { %v1289_v62 = vpop.f32.mrb[25].mxu0  ;;  %v2770_v63 = vpack.c.bf16 %v2060_v59, %v2059_v58  ;;  %v1577_v0 = vadd.f32 %v1576_v61, %v1287_v60  ;;  %v1578_v1 = vpop.f32.mrb[25].mxu1 }
 0x16d   :  { %v1290_v2 = vpop.f32.mrb[26].mxu0  ;;  %v1579_v3 = vpop.f32.mrb[26].mxu1 }
 0x16e   :  { %v1292_v4 = vpop.f32.mrb[27].mxu0  ;;  %2906 = vst [vmem:[#allocation8 + $0x28] sm:$0xff] %v2770_v63   ;;  %v1997_v5 = vadd.f32 %v3328_v17, %v1577_v0  ;;  %v1580_v6 = vadd.f32 %v1579_v3, %v1290_v2  ;;  %v1581_v7 = vpop.f32.mrb[27].mxu1 }
 0x170   :  { %v1998_v8 = vadd.f32 %v3328_v17, %v1580_v6  ;;  %v2061_v9 = vmax.f32 %v1997_v5, 0.0 }
 0x172   :  { %v2062_v10 = vmax.f32 %v1998_v8, 0.0 }
 0x173   :  { %v1295_v11 = vpop.f32.mrb[28].mxu0  ;;  %v1584_v12 = vpop.f32.mrb[28].mxu1 }
 0x174   :  { %v1297_v13 = vpop.f32.mrb[29].mxu0  ;;  %v2775_v14 = vpack.c.bf16 %v2062_v10, %v2061_v9  ;;  %v1585_v15 = vadd.f32 %v1584_v12, %v1295_v11  ;;  %v1586_v16 = vpop.f32.mrb[29].mxu1 }
 0x175   :  { %v1298_v18 = vpop.f32.mrb[30].mxu0  ;;  %v1587_v19 = vpop.f32.mrb[30].mxu1 }
 0x176   :  { %v1300_v20 = vpop.f32.mrb[31].mxu0  ;;  %2907 = vst [vmem:[#allocation8 + $0x30] sm:$0xff] %v2775_v14   ;;  %v1999_v21 = vadd.f32 %v3328_v17, %v1585_v15  ;;  %v1588_v22 = vadd.f32 %v1587_v19, %v1298_v18  ;;  %v1589_v23 = vpop.f32.mrb[31].mxu1 }
 0x178   :  { %v2000_v24 = vadd.f32 %v3328_v17, %v1588_v22  ;;  %v2063_v25 = vmax.f32 %v1999_v21, 0.0 }
 0x17a   :  { %v2064_v26 = vmax.f32 %v2000_v24, 0.0 }
 0x17b   :  { %v1303_v27 = vpop.f32.mrb[32].mxu0  ;;  %v1592_v28 = vpop.f32.mrb[32].mxu1 }
 0x17c   :  { %v1305_v29 = vpop.f32.mrb[33].mxu0  ;;  %v2780_v30 = vpack.c.bf16 %v2064_v26, %v2063_v25  ;;  %v1593_v31 = vadd.f32 %v1592_v28, %v1303_v27  ;;  %v1594_v32 = vpop.f32.mrb[33].mxu1 }
 0x17d   :  { %v1306_v33 = vpop.f32.mrb[34].mxu0  ;;  %v1595_v34 = vpop.f32.mrb[34].mxu1 }
 0x17e   :  { %v1308_v35 = vpop.f32.mrb[35].mxu0  ;;  %2908 = vst [vmem:[#allocation8 + $0x38] sm:$0xff] %v2780_v30   ;;  %v2001_v36 = vadd.f32 %v3328_v17, %v1593_v31  ;;  %v1596_v37 = vadd.f32 %v1595_v34, %v1306_v33  ;;  %v1597_v38 = vpop.f32.mrb[35].mxu1 }
 0x180   :  { %v2002_v39 = vadd.f32 %v3328_v17, %v1596_v37  ;;  %v2065_v40 = vmax.f32 %v2001_v36, 0.0 }
 0x182   :  { %v2066_v41 = vmax.f32 %v2002_v39, 0.0 }
 0x183   :  { %v1311_v42 = vpop.f32.mrb[36].mxu0  ;;  %v1600_v43 = vpop.f32.mrb[36].mxu1 }
 0x184   :  { %v1313_v44 = vpop.f32.mrb[37].mxu0  ;;  %v2785_v45 = vpack.c.bf16 %v2066_v41, %v2065_v40  ;;  %v1601_v46 = vadd.f32 %v1600_v43, %v1311_v42  ;;  %v1602_v47 = vpop.f32.mrb[37].mxu1 }
 0x185   :  { %v1314_v48 = vpop.f32.mrb[38].mxu0  ;;  %v1603_v49 = vpop.f32.mrb[38].mxu1 }
 0x186   :  { %v1316_v50 = vpop.f32.mrb[39].mxu0  ;;  %2909 = vst [vmem:[#allocation8 + $0x40] sm:$0xff] %v2785_v45   ;;  %v2003_v51 = vadd.f32 %v3328_v17, %v1601_v46  ;;  %v1604_v52 = vadd.f32 %v1603_v49, %v1314_v48  ;;  %v1605_v53 = vpop.f32.mrb[39].mxu1 }
 0x188   :  { %v2004_v54 = vadd.f32 %v3328_v17, %v1604_v52  ;;  %v2067_v55 = vmax.f32 %v2003_v51, 0.0 }
 0x18a   :  { %v2068_v56 = vmax.f32 %v2004_v54, 0.0 }
 0x18b   :  { %v1319_v57 = vpop.f32.mrb[40].mxu0  ;;  %v1608_v58 = vpop.f32.mrb[40].mxu1 }
 0x18c   :  { %v1321_v59 = vpop.f32.mrb[41].mxu0  ;;  %v2790_v60 = vpack.c.bf16 %v2068_v56, %v2067_v55  ;;  %v1609_v61 = vadd.f32 %v1608_v58, %v1319_v57  ;;  %v1610_v62 = vpop.f32.mrb[41].mxu1 }
 0x18d   :  { %v1322_v63 = vpop.f32.mrb[42].mxu0  ;;  %v1611_v0 = vpop.f32.mrb[42].mxu1 }
 0x18e   :  { %v1324_v1 = vpop.f32.mrb[43].mxu0  ;;  %2910 = vst [vmem:[#allocation8 + $0x48] sm:$0xff] %v2790_v60   ;;  %v2005_v2 = vadd.f32 %v3328_v17, %v1609_v61  ;;  %v1612_v3 = vadd.f32 %v1611_v0, %v1322_v63  ;;  %v1613_v4 = vpop.f32.mrb[43].mxu1 }
 0x190   :  { %v2006_v5 = vadd.f32 %v3328_v17, %v1612_v3  ;;  %v2069_v6 = vmax.f32 %v2005_v2, 0.0 }
 0x192   :  { %v2070_v7 = vmax.f32 %v2006_v5, 0.0 }
 0x193   :  { %v1327_v8 = vpop.f32.mrb[44].mxu0  ;;  %v1616_v9 = vpop.f32.mrb[44].mxu1 }
 0x194   :  { %v1329_v10 = vpop.f32.mrb[45].mxu0  ;;  %v2795_v11 = vpack.c.bf16 %v2070_v7, %v2069_v6  ;;  %v1617_v12 = vadd.f32 %v1616_v9, %v1327_v8  ;;  %v1618_v13 = vpop.f32.mrb[45].mxu1 }
 0x195   :  { %v1330_v14 = vpop.f32.mrb[46].mxu0  ;;  %v1619_v15 = vpop.f32.mrb[46].mxu1 }
 0x196   :  { %v1332_v16 = vpop.f32.mrb[47].mxu0  ;;  %2911 = vst [vmem:[#allocation8 + $0x50] sm:$0xff] %v2795_v11   ;;  %v2007_v18 = vadd.f32 %v3328_v17, %v1617_v12  ;;  %v1620_v19 = vadd.f32 %v1619_v15, %v1330_v14  ;;  %v1621_v20 = vpop.f32.mrb[47].mxu1 }
 0x198   :  { %v2008_v21 = vadd.f32 %v3328_v17, %v1620_v19  ;;  %v2071_v22 = vmax.f32 %v2007_v18, 0.0 }
 0x19a   :  { %v2072_v23 = vmax.f32 %v2008_v21, 0.0 }
 0x19b   :  { %v1335_v24 = vpop.f32.mrb[48].mxu0  ;;  %v1624_v25 = vpop.f32.mrb[48].mxu1 }
 0x19c   :  { %v1337_v26 = vpop.f32.mrb[49].mxu0  ;;  %v2800_v27 = vpack.c.bf16 %v2072_v23, %v2071_v22  ;;  %v1625_v28 = vadd.f32 %v1624_v25, %v1335_v24  ;;  %v1626_v29 = vpop.f32.mrb[49].mxu1 }
 0x19d   :  { %v1338_v30 = vpop.f32.mrb[50].mxu0  ;;  %v1627_v31 = vpop.f32.mrb[50].mxu1 }
 0x19e   :  { %v1340_v32 = vpop.f32.mrb[51].mxu0  ;;  %2912 = vst [vmem:[#allocation8 + $0x58] sm:$0xff] %v2800_v27   ;;  %v2009_v33 = vadd.f32 %v3328_v17, %v1625_v28  ;;  %v1628_v34 = vadd.f32 %v1627_v31, %v1338_v30  ;;  %v1629_v35 = vpop.f32.mrb[51].mxu1 }
 0x1a0   :  { %v2010_v36 = vadd.f32 %v3328_v17, %v1628_v34  ;;  %v2073_v37 = vmax.f32 %v2009_v33, 0.0 }
 0x1a2   :  { %v2074_v38 = vmax.f32 %v2010_v36, 0.0 }
 0x1a3   :  { %v1343_v39 = vpop.f32.mrb[52].mxu0  ;;  %v1632_v40 = vpop.f32.mrb[52].mxu1 }
 0x1a4   :  { %v1345_v41 = vpop.f32.mrb[53].mxu0  ;;  %v2805_v42 = vpack.c.bf16 %v2074_v38, %v2073_v37  ;;  %v1633_v43 = vadd.f32 %v1632_v40, %v1343_v39  ;;  %v1634_v44 = vpop.f32.mrb[53].mxu1 }
 0x1a5   :  { %v1346_v45 = vpop.f32.mrb[54].mxu0  ;;  %v1635_v46 = vpop.f32.mrb[54].mxu1 }
 0x1a6   :  { %v1348_v47 = vpop.f32.mrb[55].mxu0  ;;  %2913 = vst [vmem:[#allocation8 + $0x60] sm:$0xff] %v2805_v42   ;;  %v2011_v48 = vadd.f32 %v3328_v17, %v1633_v43  ;;  %v1636_v49 = vadd.f32 %v1635_v46, %v1346_v45  ;;  %v1637_v50 = vpop.f32.mrb[55].mxu1 }
 0x1a8   :  { %v2012_v51 = vadd.f32 %v3328_v17, %v1636_v49  ;;  %v2075_v52 = vmax.f32 %v2011_v48, 0.0 }
 0x1aa   :  { %v2076_v53 = vmax.f32 %v2012_v51, 0.0 }
 0x1ab   :  { %v1351_v54 = vpop.f32.mrb[56].mxu0  ;;  %v1640_v55 = vpop.f32.mrb[56].mxu1 }
 0x1ac   :  { %v1353_v56 = vpop.f32.mrb[57].mxu0  ;;  %v2810_v57 = vpack.c.bf16 %v2076_v53, %v2075_v52  ;;  %v1641_v58 = vadd.f32 %v1640_v55, %v1351_v54  ;;  %v1642_v59 = vpop.f32.mrb[57].mxu1 }
 0x1ad   :  { %v1354_v60 = vpop.f32.mrb[58].mxu0  ;;  %v1643_v61 = vpop.f32.mrb[58].mxu1 }
 0x1ae   :  { %v1356_v62 = vpop.f32.mrb[59].mxu0  ;;  %2914 = vst [vmem:[#allocation8 + $0x68] sm:$0xff] %v2810_v57   ;;  %v2013_v63 = vadd.f32 %v3328_v17, %v1641_v58  ;;  %v1644_v0 = vadd.f32 %v1643_v61, %v1354_v60  ;;  %v1645_v1 = vpop.f32.mrb[59].mxu1 }
 0x1b0   :  { %v2014_v2 = vadd.f32 %v3328_v17, %v1644_v0  ;;  %v2077_v3 = vmax.f32 %v2013_v63, 0.0 }
 0x1b2   :  { %v2078_v4 = vmax.f32 %v2014_v2, 0.0 }
 0x1b3   :  { %v1359_v5 = vpop.f32.mrb[60].mxu0  ;;  %v1648_v6 = vpop.f32.mrb[60].mxu1 }
 0x1b4   :  { %v1361_v7 = vpop.f32.mrb[61].mxu0  ;;  %v2815_v8 = vpack.c.bf16 %v2078_v4, %v2077_v3  ;;  %v1649_v9 = vadd.f32 %v1648_v6, %v1359_v5  ;;  %v1650_v10 = vpop.f32.mrb[61].mxu1 }
 0x1b5   :  { %v1362_v11 = vpop.f32.mrb[62].mxu0  ;;  %v1651_v12 = vpop.f32.mrb[62].mxu1 }
 0x1b6   :  { %v1364_v13 = vpop.f32.mrb[63].mxu0  ;;  %2915 = vst [vmem:[#allocation8 + $0x70] sm:$0xff] %v2815_v8   ;;  %v2015_v14 = vadd.f32 %v3328_v17, %v1649_v9  ;;  %v1652_v15 = vadd.f32 %v1651_v12, %v1362_v11  ;;  %v1653_v16 = vpop.f32.mrb[63].mxu1 }
 0x1b8   :  { %v2016_v18 = vadd.f32 %v3328_v17, %v1652_v15  ;;  %v2079_v19 = vmax.f32 %v2015_v14, 0.0 }
 0x1ba   :  { %v2080_v20 = vmax.f32 %v2016_v18, 0.0 }
 0x1bb   :  { %v1367_v21 = vpop.f32.mrb[64].mxu0  ;;  %v1656_v22 = vpop.f32.mrb[64].mxu1 }
 0x1bc   :  { %v1369_v23 = vpop.f32.mrb[65].mxu0  ;;  %v2820_v24 = vpack.c.bf16 %v2080_v20, %v2079_v19  ;;  %v1657_v25 = vadd.f32 %v1656_v22, %v1367_v21  ;;  %v1658_v26 = vpop.f32.mrb[65].mxu1 }
 0x1bd   :  { %v1370_v27 = vpop.f32.mrb[66].mxu0  ;;  %v1659_v28 = vpop.f32.mrb[66].mxu1 }
 0x1be   :  { %v1372_v29 = vpop.f32.mrb[67].mxu0  ;;  %2916 = vst [vmem:[#allocation8 + $0x78] sm:$0xff] %v2820_v24   ;;  %v2017_v30 = vadd.f32 %v3328_v17, %v1657_v25  ;;  %v1660_v31 = vadd.f32 %v1659_v28, %v1370_v27  ;;  %v1661_v32 = vpop.f32.mrb[67].mxu1 }
 0x1c0   :  { %v2018_v33 = vadd.f32 %v3328_v17, %v1660_v31  ;;  %v2081_v34 = vmax.f32 %v2017_v30, 0.0 }
 0x1c2   :  { %v2082_v35 = vmax.f32 %v2018_v33, 0.0 }
 0x1c3   :  { %v1375_v36 = vpop.f32.mrb[68].mxu0  ;;  %v1664_v37 = vpop.f32.mrb[68].mxu1 }
 0x1c4   :  { %v1377_v38 = vpop.f32.mrb[69].mxu0  ;;  %v2825_v39 = vpack.c.bf16 %v2082_v35, %v2081_v34  ;;  %v1665_v40 = vadd.f32 %v1664_v37, %v1375_v36  ;;  %v1666_v41 = vpop.f32.mrb[69].mxu1 }
 0x1c5   :  { %v1378_v42 = vpop.f32.mrb[70].mxu0  ;;  %v1667_v43 = vpop.f32.mrb[70].mxu1 }
 0x1c6   :  { %v1380_v44 = vpop.f32.mrb[71].mxu0  ;;  %2917 = vst [vmem:[#allocation8 + $0x80] sm:$0xff] %v2825_v39   ;;  %v2019_v45 = vadd.f32 %v3328_v17, %v1665_v40  ;;  %v1668_v46 = vadd.f32 %v1667_v43, %v1378_v42  ;;  %v1669_v47 = vpop.f32.mrb[71].mxu1 }
 0x1c8   :  { %v2020_v48 = vadd.f32 %v3328_v17, %v1668_v46  ;;  %v2083_v49 = vmax.f32 %v2019_v45, 0.0 }
 0x1ca   :  { %v2084_v50 = vmax.f32 %v2020_v48, 0.0 }
 0x1cb   :  { %v1383_v51 = vpop.f32.mrb[72].mxu0  ;;  %v1672_v52 = vpop.f32.mrb[72].mxu1 }
 0x1cc   :  { %v1385_v53 = vpop.f32.mrb[73].mxu0  ;;  %v2830_v54 = vpack.c.bf16 %v2084_v50, %v2083_v49  ;;  %v1673_v55 = vadd.f32 %v1672_v52, %v1383_v51  ;;  %v1674_v56 = vpop.f32.mrb[73].mxu1 }
 0x1cd   :  { %v1386_v57 = vpop.f32.mrb[74].mxu0  ;;  %v1675_v58 = vpop.f32.mrb[74].mxu1 }
 0x1ce   :  { %v1388_v59 = vpop.f32.mrb[75].mxu0  ;;  %2918 = vst [vmem:[#allocation8 + $0x88] sm:$0xff] %v2830_v54   ;;  %v2021_v60 = vadd.f32 %v3328_v17, %v1673_v55  ;;  %v1676_v61 = vadd.f32 %v1675_v58, %v1386_v57  ;;  %v1677_v62 = vpop.f32.mrb[75].mxu1 }
 0x1d0   :  { %v2022_v63 = vadd.f32 %v3328_v17, %v1676_v61  ;;  %v2085_v0 = vmax.f32 %v2021_v60, 0.0 }
 0x1d2   :  { %v2086_v1 = vmax.f32 %v2022_v63, 0.0 }
 0x1d3   :  { %v1391_v2 = vpop.f32.mrb[76].mxu0  ;;  %v1680_v3 = vpop.f32.mrb[76].mxu1 }
 0x1d4   :  { %v1393_v4 = vpop.f32.mrb[77].mxu0  ;;  %v2835_v5 = vpack.c.bf16 %v2086_v1, %v2085_v0  ;;  %v1681_v6 = vadd.f32 %v1680_v3, %v1391_v2  ;;  %v1682_v7 = vpop.f32.mrb[77].mxu1 }
 0x1d5   :  { %v1394_v8 = vpop.f32.mrb[78].mxu0  ;;  %v1683_v9 = vpop.f32.mrb[78].mxu1 }
 0x1d6   :  { %v1396_v10 = vpop.f32.mrb[79].mxu0  ;;  %2919 = vst [vmem:[#allocation8 + $0x90] sm:$0xff] %v2835_v5   ;;  %v2023_v11 = vadd.f32 %v3328_v17, %v1681_v6  ;;  %v1684_v12 = vadd.f32 %v1683_v9, %v1394_v8  ;;  %v1685_v13 = vpop.f32.mrb[79].mxu1 }
 0x1d8   :  { %v2024_v14 = vadd.f32 %v3328_v17, %v1684_v12  ;;  %v2087_v15 = vmax.f32 %v2023_v11, 0.0 }
 0x1da   :  { %v2088_v16 = vmax.f32 %v2024_v14, 0.0 }
 0x1db   :  { %v1399_v18 = vpop.f32.mrb[80].mxu0  ;;  %v1688_v19 = vpop.f32.mrb[80].mxu1 }
 0x1dc   :  { %v1401_v20 = vpop.f32.mrb[81].mxu0  ;;  %v2840_v21 = vpack.c.bf16 %v2088_v16, %v2087_v15  ;;  %v1689_v22 = vadd.f32 %v1688_v19, %v1399_v18  ;;  %v1690_v23 = vpop.f32.mrb[81].mxu1 }
 0x1dd   :  { %v1402_v24 = vpop.f32.mrb[82].mxu0  ;;  %v1691_v25 = vpop.f32.mrb[82].mxu1 }
 0x1de   :  { %v1404_v26 = vpop.f32.mrb[83].mxu0  ;;  %2920 = vst [vmem:[#allocation8 + $0x98] sm:$0xff] %v2840_v21   ;;  %v2025_v27 = vadd.f32 %v3328_v17, %v1689_v22  ;;  %v1692_v28 = vadd.f32 %v1691_v25, %v1402_v24  ;;  %v1693_v29 = vpop.f32.mrb[83].mxu1 }
 0x1e0   :  { %v2026_v30 = vadd.f32 %v3328_v17, %v1692_v28  ;;  %v2089_v31 = vmax.f32 %v2025_v27, 0.0 }
 0x1e2   :  { %v2090_v32 = vmax.f32 %v2026_v30, 0.0 }
 0x1e3   :  { %v1407_v33 = vpop.f32.mrb[84].mxu0  ;;  %v1696_v34 = vpop.f32.mrb[84].mxu1 }
 0x1e4   :  { %v1409_v35 = vpop.f32.mrb[85].mxu0  ;;  %v2845_v36 = vpack.c.bf16 %v2090_v32, %v2089_v31  ;;  %v1697_v37 = vadd.f32 %v1696_v34, %v1407_v33  ;;  %v1698_v38 = vpop.f32.mrb[85].mxu1 }
 0x1e5   :  { %v1410_v39 = vpop.f32.mrb[86].mxu0  ;;  %v1699_v40 = vpop.f32.mrb[86].mxu1 }
 0x1e6   :  { %v1412_v41 = vpop.f32.mrb[87].mxu0  ;;  %2921 = vst [vmem:[#allocation8 + $0xa0] sm:$0xff] %v2845_v36   ;;  %v2027_v42 = vadd.f32 %v3328_v17, %v1697_v37  ;;  %v1700_v43 = vadd.f32 %v1699_v40, %v1410_v39  ;;  %v1701_v44 = vpop.f32.mrb[87].mxu1 }
 0x1e8   :  { %v2028_v45 = vadd.f32 %v3328_v17, %v1700_v43  ;;  %v2091_v46 = vmax.f32 %v2027_v42, 0.0 }
 0x1ea   :  { %v2092_v47 = vmax.f32 %v2028_v45, 0.0 }
 0x1eb   :  { %v1415_v48 = vpop.f32.mrb[88].mxu0  ;;  %v1704_v49 = vpop.f32.mrb[88].mxu1 }
 0x1ec   :  { %v1417_v50 = vpop.f32.mrb[89].mxu0  ;;  %v2850_v51 = vpack.c.bf16 %v2092_v47, %v2091_v46  ;;  %v1705_v52 = vadd.f32 %v1704_v49, %v1415_v48  ;;  %v1706_v53 = vpop.f32.mrb[89].mxu1 }
 0x1ed   :  { %v1418_v54 = vpop.f32.mrb[90].mxu0  ;;  %v1707_v55 = vpop.f32.mrb[90].mxu1 }
 0x1ee   :  { %v1420_v56 = vpop.f32.mrb[91].mxu0  ;;  %2922 = vst [vmem:[#allocation8 + $0xa8] sm:$0xff] %v2850_v51   ;;  %v2029_v57 = vadd.f32 %v3328_v17, %v1705_v52  ;;  %v1708_v58 = vadd.f32 %v1707_v55, %v1418_v54  ;;  %v1709_v59 = vpop.f32.mrb[91].mxu1 }
 0x1f0   :  { %v2030_v60 = vadd.f32 %v3328_v17, %v1708_v58  ;;  %v2093_v61 = vmax.f32 %v2029_v57, 0.0 }
 0x1f2   :  { %v2094_v62 = vmax.f32 %v2030_v60, 0.0 }
 0x1f3   :  { %v1423_v63 = vpop.f32.mrb[92].mxu0  ;;  %v1712_v0 = vpop.f32.mrb[92].mxu1 }
 0x1f4   :  { %v1425_v1 = vpop.f32.mrb[93].mxu0  ;;  %v2855_v2 = vpack.c.bf16 %v2094_v62, %v2093_v61  ;;  %v1713_v3 = vadd.f32 %v1712_v0, %v1423_v63  ;;  %v1714_v4 = vpop.f32.mrb[93].mxu1 }
 0x1f5   :  { %v1426_v5 = vpop.f32.mrb[94].mxu0  ;;  %v1715_v6 = vpop.f32.mrb[94].mxu1 }
 0x1f6   :  { %v1428_v7 = vpop.f32.mrb[95].mxu0  ;;  %2923 = vst [vmem:[#allocation8 + $0xb0] sm:$0xff] %v2855_v2   ;;  %v2031_v8 = vadd.f32 %v3328_v17, %v1713_v3  ;;  %v1716_v9 = vadd.f32 %v1715_v6, %v1426_v5  ;;  %v1717_v10 = vpop.f32.mrb[95].mxu1 }
 0x1f8   :  { %v2032_v11 = vadd.f32 %v3328_v17, %v1716_v9  ;;  %v2095_v12 = vmax.f32 %v2031_v8, 0.0 }
 0x1fa   :  { %v2096_v13 = vmax.f32 %v2032_v11, 0.0 }
 0x1fb   :  { %v1431_v14 = vpop.f32.mrb[96].mxu0  ;;  %v1720_v15 = vpop.f32.mrb[96].mxu1 }
 0x1fc   :  { %v1433_v16 = vpop.f32.mrb[97].mxu0  ;;  %v2860_v18 = vpack.c.bf16 %v2096_v13, %v2095_v12  ;;  %v1721_v19 = vadd.f32 %v1720_v15, %v1431_v14  ;;  %v1722_v20 = vpop.f32.mrb[97].mxu1 }
 0x1fd   :  { %v1434_v21 = vpop.f32.mrb[98].mxu0  ;;  %v1723_v22 = vpop.f32.mrb[98].mxu1 }
 0x1fe   :  { %v1436_v23 = vpop.f32.mrb[99].mxu0  ;;  %2924 = vst [vmem:[#allocation8 + $0xb8] sm:$0xff] %v2860_v18   ;;  %v2033_v24 = vadd.f32 %v3328_v17, %v1721_v19  ;;  %v1724_v25 = vadd.f32 %v1723_v22, %v1434_v21  ;;  %v1725_v26 = vpop.f32.mrb[99].mxu1 }
 0x200   :  { %v2034_v27 = vadd.f32 %v3328_v17, %v1724_v25  ;;  %v2097_v28 = vmax.f32 %v2033_v24, 0.0 }
 0x202   :  { %v2098_v29 = vmax.f32 %v2034_v27, 0.0 }
 0x203   :  { %v1439_v30 = vpop.f32.mrb[100].mxu0  ;;  %v1728_v31 = vpop.f32.mrb[100].mxu1 }
 0x204   :  { %v1441_v32 = vpop.f32.mrb[101].mxu0  ;;  %v2865_v33 = vpack.c.bf16 %v2098_v29, %v2097_v28  ;;  %v1729_v34 = vadd.f32 %v1728_v31, %v1439_v30  ;;  %v1730_v35 = vpop.f32.mrb[101].mxu1 }
 0x205   :  { %v1442_v36 = vpop.f32.mrb[102].mxu0  ;;  %v1731_v37 = vpop.f32.mrb[102].mxu1 }
 0x206   :  { %v1444_v38 = vpop.f32.mrb[103].mxu0  ;;  %2925 = vst [vmem:[#allocation8 + $0xc0] sm:$0xff] %v2865_v33   ;;  %v2035_v39 = vadd.f32 %v3328_v17, %v1729_v34  ;;  %v1732_v40 = vadd.f32 %v1731_v37, %v1442_v36  ;;  %v1733_v41 = vpop.f32.mrb[103].mxu1 }
 0x208   :  { %v2036_v42 = vadd.f32 %v3328_v17, %v1732_v40  ;;  %v2099_v43 = vmax.f32 %v2035_v39, 0.0 }
 0x20a   :  { %v2100_v44 = vmax.f32 %v2036_v42, 0.0 }
 0x20b   :  { %v1447_v45 = vpop.f32.mrb[104].mxu0  ;;  %v1736_v46 = vpop.f32.mrb[104].mxu1 }
 0x20c   :  { %v1449_v47 = vpop.f32.mrb[105].mxu0  ;;  %v2870_v48 = vpack.c.bf16 %v2100_v44, %v2099_v43  ;;  %v1737_v49 = vadd.f32 %v1736_v46, %v1447_v45  ;;  %v1738_v50 = vpop.f32.mrb[105].mxu1 }
 0x20d   :  { %v1450_v51 = vpop.f32.mrb[106].mxu0  ;;  %v1739_v52 = vpop.f32.mrb[106].mxu1 }
 0x20e   :  { %v1452_v53 = vpop.f32.mrb[107].mxu0  ;;  %2926 = vst [vmem:[#allocation8 + $0xc8] sm:$0xff] %v2870_v48   ;;  %v2037_v54 = vadd.f32 %v3328_v17, %v1737_v49  ;;  %v1740_v55 = vadd.f32 %v1739_v52, %v1450_v51  ;;  %v1741_v56 = vpop.f32.mrb[107].mxu1  ;;  %v3165_v51 = vld [vmem:[%s3410_s2] ss:$0 sm:$0xff]  ;;  %s3245_s2 = smov [#allocation8]  }
 0x20f   :  { %s2438_s15 = sshll.u32 %s3245_s2, 4  ;;  %s2439_s15 = int_to_ptr.vmem [resolvable:$true] %s2438_s15 }
 0x210   :  { %v2038_v57 = vadd.f32 %v3328_v17, %v1740_v55  ;;  %v2101_v58 = vmax.f32 %v2037_v54, 0.0  ;;  %s3210_s16 = scalar_lea.vmem %s2439_s15, 4096  ;;  %p3215_p3 = scmp.lt.s32.totalorder %s2439_s15, %s2439_s15 }
 0x211   :  { %p3211_p2 = scmp.ne.s32.totalorder %s2439_s15, %s3210_s16  ;;  %p3216_p4 = scmp.lt.s32.totalorder %s3210_s16, %s3210_s16 }
 0x212   :  { %v2102_v59 = vmax.f32 %v2038_v57, 0.0 }
 0x213   :  { %v1455_v60 = vpop.f32.mrb[108].mxu0  ;;  %v1744_v61 = vpop.f32.mrb[108].mxu1  ;;  %p3217_p5 = por %p3216_p4, %p3215_p3 }
 0x214   :  { %v1457_v62 = vpop.f32.mrb[109].mxu0  ;;  %v2875_v63 = vpack.c.bf16 %v2102_v59, %v2101_v58  ;;  %v1745_v0 = vadd.f32 %v1744_v61, %v1455_v60  ;;  %v1746_v1 = vpop.f32.mrb[109].mxu1 }
 0x215   :  { %v1458_v2 = vpop.f32.mrb[110].mxu0  ;;  %v1747_v3 = vpop.f32.mrb[110].mxu1  ;;  %p3218_p6 = pnand %p3217_p5, %p3211_p2 }
 0x216   :  { %v1460_v4 = vpop.f32.mrb[111].mxu0  ;;  %2927 = vst [vmem:[#allocation8 + $0xd0] sm:$0xff] %v2875_v63   ;;  %v2039_v5 = vadd.f32 %v3328_v17, %v1745_v0  ;;  %v1748_v6 = vadd.f32 %v1747_v3, %v1458_v2  ;;  %v1749_v7 = vpop.f32.mrb[111].mxu1 }
 0x218   :  { %v2040_v8 = vadd.f32 %v3328_v17, %v1748_v6  ;;  %v2103_v9 = vmax.f32 %v2039_v5, 0.0 }
 0x21a   :  { %v2104_v10 = vmax.f32 %v2040_v8, 0.0 }
 0x21b   :  { %v1463_v11 = vpop.f32.mrb[112].mxu0  ;;  %v1752_v12 = vpop.f32.mrb[112].mxu1 }
 0x21c   :  { %v1465_v13 = vpop.f32.mrb[113].mxu0  ;;  %v2880_v14 = vpack.c.bf16 %v2104_v10, %v2103_v9  ;;  %v1753_v15 = vadd.f32 %v1752_v12, %v1463_v11  ;;  %v1754_v16 = vpop.f32.mrb[113].mxu1 }
 0x21d   :  { %v1466_v18 = vpop.f32.mrb[114].mxu0  ;;  %v1755_v19 = vpop.f32.mrb[114].mxu1 }
 0x21e   :  { %v1468_v20 = vpop.f32.mrb[115].mxu0  ;;  %2928 = vst [vmem:[#allocation8 + $0xd8] sm:$0xff] %v2880_v14   ;;  %v2041_v21 = vadd.f32 %v3328_v17, %v1753_v15  ;;  %v1756_v22 = vadd.f32 %v1755_v19, %v1466_v18  ;;  %v1757_v23 = vpop.f32.mrb[115].mxu1 }
 0x220   :  { %v2042_v24 = vadd.f32 %v3328_v17, %v1756_v22  ;;  %v2105_v25 = vmax.f32 %v2041_v21, 0.0 }
 0x222   :  { %v2106_v26 = vmax.f32 %v2042_v24, 0.0 }
 0x223   :  { %v1471_v27 = vpop.f32.mrb[116].mxu0  ;;  %v1760_v28 = vpop.f32.mrb[116].mxu1 }
 0x224   :  { %v1473_v29 = vpop.f32.mrb[117].mxu0  ;;  %v2885_v30 = vpack.c.bf16 %v2106_v26, %v2105_v25  ;;  %v1761_v31 = vadd.f32 %v1760_v28, %v1471_v27  ;;  %v1762_v32 = vpop.f32.mrb[117].mxu1 }
 0x225   :  { %v1474_v33 = vpop.f32.mrb[118].mxu0  ;;  %v1763_v34 = vpop.f32.mrb[118].mxu1 }
 0x226   :  { %v1476_v35 = vpop.f32.mrb[119].mxu0  ;;  %2929 = vst [vmem:[#allocation8 + $0xe0] sm:$0xff] %v2885_v30   ;;  %v2043_v36 = vadd.f32 %v3328_v17, %v1761_v31  ;;  %v1764_v37 = vadd.f32 %v1763_v34, %v1474_v33  ;;  %v1765_v38 = vpop.f32.mrb[119].mxu1 }
 0x228   :  { %v2044_v39 = vadd.f32 %v3328_v17, %v1764_v37  ;;  %v2107_v40 = vmax.f32 %v2043_v36, 0.0 }
 0x22a   :  { %v2108_v41 = vmax.f32 %v2044_v39, 0.0 }
 0x22b   :  { %v1479_v42 = vpop.f32.mrb[120].mxu0  ;;  %v1768_v43 = vpop.f32.mrb[120].mxu1 }
 0x22c   :  { %v1481_v44 = vpop.f32.mrb[121].mxu0  ;;  %v2890_v45 = vpack.c.bf16 %v2108_v41, %v2107_v40  ;;  %v1769_v46 = vadd.f32 %v1768_v43, %v1479_v42  ;;  %v1770_v47 = vpop.f32.mrb[121].mxu1 }
 0x22d   :  { %v1482_v48 = vpop.f32.mrb[122].mxu0  ;;  %v1771_v49 = vpop.f32.mrb[122].mxu1 }
 0x22e   :  { %v1484_v50 = vpop.f32.mrb[123].mxu0  ;;  %2930 = vst [vmem:[#allocation8 + $0xe8] sm:$0xff] %v2890_v45   ;;  %v2045_v52 = vadd.f32 %v3165_v51, %v1769_v46  ;;  %v1772_v53 = vadd.f32 %v1771_v49, %v1482_v48  ;;  %v1773_v54 = vpop.f32.mrb[123].mxu1 }
 0x230   :  { %v2046_v17 = vadd.f32 %v3165_v51, %v1772_v53  ;;  %v2109_v55 = vmax.f32 %v2045_v52, 0.0 }
 0x232   :  { %v2110_v56 = vmax.f32 %v2046_v17, 0.0 }
 0x233   :  { %v1487_v57 = vpop.f32.mrb[124].mxu0  ;;  %v1776_v58 = vpop.f32.mrb[124].mxu1 }
 0x234   :  { %v1489_v59 = vpop.f32.mrb[125].mxu0  ;;  %v2895_v60 = vpack.c.bf16 %v2110_v56, %v2109_v55  ;;  %v1777_v61 = vadd.f32 %v1776_v58, %v1487_v57  ;;  %v1778_v62 = vpop.f32.mrb[125].mxu1 }
 0x235   :  { %v1490_v63 = vpop.f32.mrb[126].mxu0  ;;  %v1779_v0 = vpop.f32.mrb[126].mxu1 }
 0x236   :  { %v1492_v1 = vpop.f32.mrb[127].mxu0  ;;  %2931 = vst [vmem:[#allocation8 + $0xf0] sm:$0xff] %v2895_v60   ;;  %v2047_v2 = vadd.f32 %v3165_v51, %v1777_v61  ;;  %v1780_v3 = vadd.f32 %v1779_v0, %v1490_v63  ;;  %v1781_v4 = vpop.f32.mrb[127].mxu1 }
 0x238   :  { %v2048_v5 = vadd.f32 %v3165_v51, %v1780_v3  ;;  %v2111_v6 = vmax.f32 %v2047_v2, 0.0 }
 0x23a   :  { %v2112_v7 = vmax.f32 %v2048_v5, 0.0 }
 0x23c   :  { %v2900_v8 = vpack.c.bf16 %v2112_v7, %v2111_v6 }
 0x23e   :  { %2932 = vst [vmem:[#allocation8 + $0xf8] sm:$0xff] %v2900_v8  }
 0x23f   :  { %3221 = shalt.err (!%p3218_p6)
}
 0x240   :  { %s3222_s19 = scalar_lea.hbm %s3411_s3, 4096 }
 0x241   :  { %p3223_p7 = scmp.ne.s32.totalorder %s3411_s3, %s3222_s19  ;;  %p3226_p8 = scmp.lt.u32.totalorder %s3222_s19, %s3411_s3 }
 0x243   :  { %p3228_p9 = pnand %p3226_p8, %p3223_p7 }
 0x245   :  { %3231 = shalt.err (!%p3228_p9)
}
 0x246   :  { %2444 = dma.vmem_to_hbm [thread:$0]  %s2439_s15, 4096, %s3411_s3, [#allocation5], %s3242_s0, %s3242_s0, %s3243_s9  }
 0x247   :  { %3236 = dma.done.wait [#allocation5], 4096  }
 0x248   :  { %3237 = vsyncadd [#allocation5], 4294963200 }
 0x249   :  { %2448 = vsyncpa [#allocation4], 1 }
 0x24a   :  { %2449 = vsyncpa [#allocation7], 1 }
 0x24b   :  { %2450 = vsyncpa [#allocation5], 1 }

</bundles_post_ra>
